<compile_context>
chip_gen: v7x
topology: tpu7x:2x2x1
jax: 0.10.0
libtpu: 0.0.40
codegen_flags: <defaults>
</compile_context>

<pallas_src>
import math
import functools

import jax
import jax.numpy as jnp
from jax.experimental import pallas as pl
from jax.experimental.pallas import tpu as pltpu


# -----------------------------------------------------------------------------
# Kernel A: fused QKV projection (bf16 MXU, f32 accum) + rotary (f32 VPU/XLU).
# Outputs Q/K/V in the (B, T, C) layout Kernel B consumes; softmax scale folded
# into Q.  Grid: (B, T // tq).
# -----------------------------------------------------------------------------
def _qkv_rotary_kernel(x_ref, wqkv_ref, cos_ref, sin_ref, q_ref, k_ref, v_ref, *,
                       C, scale):
    x = x_ref[0].astype(jnp.bfloat16)                                      # (tq, C)
    qkv = jnp.dot(x, wqkv_ref[...], preferred_element_type=jnp.float32)    # (tq, 3C) f32
    q = qkv[:, 0:C]
    k = qkv[:, C:2 * C]
    v = qkv[:, 2 * C:3 * C]

    cos = cos_ref[...]                       # (tq, C) f32
    sin = sin_ref[...]                       # (tq, C) f32, sign folded (-sin even / +sin odd)

    # Pair swap (lane 2i <-> 2i+1) on the XLU: two lane rotations + parity select.
    lane = jax.lax.broadcasted_iota(jnp.int32, q.shape, 1)
    is_even = (lane % 2) == 0

    def rot(t):
        nxt = pltpu.roll(t, C - 1, 1)        # [j] <- t[j+1]  (shift C-1 == -1 mod C)
        prv = pltpu.roll(t, 1, 1)            # [j] <- t[j-1]
        swapped = jnp.where(is_even, nxt, prv)
        return t * cos + swapped * sin

    q_ref[0] = (rot(q) * scale).astype(q_ref.dtype)   # scale folded into Q
    k_ref[0] = rot(k).astype(k_ref.dtype)
    v_ref[0] = v.astype(v_ref.dtype)


# -----------------------------------------------------------------------------
# Kernel B: flash attention with online softmax, heads handled by a short static
# loop over lane slices of the (tq, C) / (tk, C) tiles, plus the output
# projection fused into the finalize step.
# Grid: (B, T // tq, T // tk), reduction (kv) axis last / "arbitrary".
# -----------------------------------------------------------------------------
def _flash_attn_kernel(q_ref, k_ref, v_ref, mask_ref, wproj_ref, o_ref,
                       m_sc, l_sc, acc_sc, *, num_heads, head_dim):
    ki = pl.program_id(2)
    H, hd = num_heads, head_dim

    @pl.when(ki == 0)
    def _():
        m_sc[...] = jnp.full(m_sc.shape, -jnp.inf, m_sc.dtype)
        l_sc[...] = jnp.zeros(l_sc.shape, l_sc.dtype)
        acc_sc[...] = jnp.zeros(acc_sc.shape, acc_sc.dtype)

    q = q_ref[0]                                        # (tq, C) bf16 (pre-scaled)
    k = k_ref[0]                                        # (tk, C) bf16
    v = v_ref[0]                                        # (tk, C) bf16
    mask = mask_ref[...].astype(jnp.float32)            # (tq, tk) additive mask tile

    for h in range(H):                                  # H is small (static unroll)
        sl = slice(h * hd, (h + 1) * hd)
        qh = q[:, sl]                                   # (tq, hd)
        kh = k[:, sl]                                   # (tk, hd)
        vh = v[:, sl]                                   # (tk, hd)

        # QK^T: contraction on the last dim of both operands (no explicit .T).
        s = jax.lax.dot_general(qh, kh, (((1,), (1,)), ((), ())),
                                preferred_element_type=jnp.float32)        # (tq, tk)
        s = s + mask

        m_prev = m_sc[h]                                                   # (tq, 1)
        m_new = jnp.maximum(m_prev, jnp.max(s, axis=-1, keepdims=True))
        alpha = jnp.exp(m_prev - m_new)
        p = jnp.exp(s - m_new)                                             # (tq, tk) f32
        l_sc[h] = alpha * l_sc[h] + jnp.sum(p, axis=-1, keepdims=True)
        acc_sc[h] = alpha * acc_sc[h] + jnp.dot(
            p.astype(jnp.bfloat16), vh, preferred_element_type=jnp.float32)
        m_sc[h] = m_new

    @pl.when(ki == pl.num_programs(2) - 1)
    def _():
        # Fused output projection:  sum_h (acc_h / l_h) @ Wproj[h*hd:(h+1)*hd, :]
        # == concat_h(acc_h / l_h) @ Wproj, with clean sublane-sliced weight rows.
        wp = wproj_ref[...]                                                # (C, C) bf16
        out_acc = jnp.zeros(o_ref.shape[1:], jnp.float32)                  # (tq, C)
        for h in range(H):
            inv_l = pl.reciprocal(l_sc[h], approx=True)                    # (tq, 1)
            oh = (acc_sc[h] * inv_l).astype(jnp.bfloat16)                  # (tq, hd)
            out_acc = out_acc + jnp.dot(oh, wp[h * hd:(h + 1) * hd, :],
                                        preferred_element_type=jnp.float32)
        o_ref[0] = out_acc.astype(o_ref.dtype)


# -----------------------------------------------------------------------------
# Host-side glue: rotary tables (replaces torch complex math).
# -----------------------------------------------------------------------------
def _build_rotary_tables(cos, sin, num_heads, head_dim):
    """cos/sin: (T, head_dim//2) -> full-channel (T, C) cos and sign-folded sin tables."""
    cos_hd = jnp.repeat(cos, 2, axis=-1)                                 # (T, hd)
    sin_hd = jnp.repeat(sin, 2, axis=-1)                                 # (T, hd)
    sign = jnp.tile(jnp.array([-1.0, 1.0], dtype=jnp.float32), head_dim // 2)
    cosC = jnp.tile(cos_hd, (1, num_heads)).astype(jnp.float32)          # (T, C)
    sinC = jnp.tile(sin_hd * sign[None, :], (1, num_heads)).astype(jnp.float32)
    return cosC, sinC


# -----------------------------------------------------------------------------
# Wrapper
# -----------------------------------------------------------------------------
def multi_head_attention(x, wqkv_t, wproj_t, cos, sin, mask, *, num_heads,
                         tq=128, tk=128):
    # NOTE: on v6e/v7x, tq=tk=256 (when T >= 256) better fills the 256x256 MXU.
    B, T, C = x.shape
    H = num_heads
    hd = C // H
    scale = hd ** (-0.5)
    tq = min(tq, T)
    tk = min(tk, T)
    assert T % tq == 0 and T % tk == 0, "T must be divisible by the tile sizes"
    assert C == H * hd and hd % 2 == 0
    nq = T // tq
    nk = T // tk

    cosC, sinC = _build_rotary_tables(cos, sin, H, hd)
    wqkv_bf = wqkv_t.astype(jnp.bfloat16)    # (C, 3C)
    wproj_bf = wproj_t.astype(jnp.bfloat16)  # (C, C)
    # Mask streamed as bf16 tiles (half the DMA); promoted to f32 in-kernel.
    # Invariant: use large-negative (e.g. -1e9), not -inf, for masked positions.
    mask_bf = mask.astype(jnp.bfloat16)

    # --- Kernel A: QKV projection + rotary (+ scale folded into Q) ---
    qkv_out = jax.ShapeDtypeStruct((B, T, C), jnp.bfloat16)
    q, k, v = pl.pallas_call(
        functools.partial(_qkv_rotary_kernel, C=C, scale=scale),
        out_shape=(qkv_out, qkv_out, qkv_out),
        grid_spec=pltpu.PrefetchScalarGridSpec(
            num_scalar_prefetch=0,
            grid=(B, nq),
            in_specs=[
                pl.BlockSpec((1, tq, C), lambda b, i: (b, i, 0)),    # x tile
                pl.BlockSpec((C, 3 * C), lambda b, i: (0, 0)),       # W_qkv^T (grid-invariant)
                pl.BlockSpec((tq, C), lambda b, i: (i, 0)),          # cos tile
                pl.BlockSpec((tq, C), lambda b, i: (i, 0)),          # sin tile
            ],
            out_specs=(
                pl.BlockSpec((1, tq, C), lambda b, i: (b, i, 0)),
                pl.BlockSpec((1, tq, C), lambda b, i: (b, i, 0)),
                pl.BlockSpec((1, tq, C), lambda b, i: (b, i, 0)),
            ),
        ),
        compiler_params=pltpu.CompilerParams(
            dimension_semantics=("parallel", "parallel")),
    )(x, wqkv_bf, cosC, sinC)

    # --- Kernel B: flash attention + fused output projection ---
    out = pl.pallas_call(
        functools.partial(_flash_attn_kernel, num_heads=H, head_dim=hd),
        out_shape=jax.ShapeDtypeStruct((B, T, C), jnp.float32),
        grid_spec=pltpu.PrefetchScalarGridSpec(
            num_scalar_prefetch=0,
            grid=(B, nq, nk),
            in_specs=[
                pl.BlockSpec((1, tq, C), lambda b, qi, ki: (b, qi, 0)),  # Q
                pl.BlockSpec((1, tk, C), lambda b, qi, ki: (b, ki, 0)),  # K
                pl.BlockSpec((1, tk, C), lambda b, qi, ki: (b, ki, 0)),  # V
                pl.BlockSpec((tq, tk), lambda b, qi, ki: (qi, ki)),      # mask tile (bf16)
                pl.BlockSpec((C, C), lambda b, qi, ki: (0, 0)),          # W_proj^T (grid-invariant)
            ],
            out_specs=pl.BlockSpec((1, tq, C), lambda b, qi, ki: (b, qi, 0)),
            scratch_shapes=[
                pltpu.VMEM((H, tq, 1), jnp.float32),    # running max
                pltpu.VMEM((H, tq, 1), jnp.float32),    # running sum
                pltpu.VMEM((H, tq, hd), jnp.float32),   # output accumulator
            ],
        ),
        compiler_params=pltpu.CompilerParams(
            dimension_semantics=("parallel", "parallel", "arbitrary")),
    )(q, k, v, mask_bf, wproj_bf)

    return out


# -----------------------------------------------------------------------------
# Pure-JAX reference (f32) for verification.
# -----------------------------------------------------------------------------
def reference_mha(x, wqkv_t, wproj_t, cos, sin, mask, num_heads, head_dim):
    B, T, C = x.shape
    qkv = x @ wqkv_t
    q, k, v = jnp.split(qkv, 3, axis=-1)
    q = q.reshape(B, T, num_heads, head_dim)
    k = k.reshape(B, T, num_heads, head_dim)
    v = v.reshape(B, T, num_heads, head_dim)

    def rot(t):
        tr = t[..., 0::2]
        ti = t[..., 1::2]
        c = cos[None, :, None, :]
        s = sin[None, :, None, :]
        out_r = tr * c - ti * s
        out_i = tr * s + ti * c
        return jnp.stack([out_r, out_i], axis=-1).reshape(B, T, num_heads, head_dim)

    q, k = rot(q), rot(k)
    q = q.transpose(0, 2, 1, 3)
    k = k.transpose(0, 2, 1, 3)
    v = v.transpose(0, 2, 1, 3)
    s = jnp.einsum('bhtd,bhsd->bhts', q, k) / math.sqrt(head_dim) + mask[None, None]
    a = jax.nn.softmax(s, axis=-1)
    o = jnp.einsum('bhts,bhsd->bhtd', a, v)
    o = o.transpose(0, 2, 1, 3).reshape(B, T, C)
    return o @ wproj_t


# -----------------------------------------------------------------------------
if __name__ == "__main__":
    B, T, num_heads, head_dim = 2, 256, 4, 32
    C = num_heads * head_dim          # dim = 128

    key = jax.random.PRNGKey(0)
    kx, kqkv, kproj = jax.random.split(key, 3)

    # deterministic "module parameters" (nn.Linear-style init, bias=False)
    bound = 1.0 / math.sqrt(C)
    w_qkv = jax.random.uniform(kqkv, (3 * C, C), jnp.float32, -bound, bound)   # (out, in)
    w_proj = jax.random.uniform(kproj, (C, C), jnp.float32, -bound, bound)     # (out, in)
    wqkv_t = w_qkv.T       # (C, 3C)
    wproj_t = w_proj.T     # (C, C)

    # input
    x = jax.random.normal(kx, (B, T, C), jnp.float32)

    # rotary frequencies (the complex `freqs` of the PyTorch module, kept as cos/sin)
    inv_freq = 1.0 / (10000.0 ** (jnp.arange(0, head_dim, 2, dtype=jnp.float32) / head_dim))
    angles = jnp.arange(T, dtype=jnp.float32)[:, None] * inv_freq[None, :]     # (T, hd/2)
    cos, sin = jnp.cos(angles), jnp.sin(angles)

    # additive float attention mask (causal), shape (T, T) — stays a tensor input
    # (the module passes `mask` to F.scaled_dot_product_attention).
    mask = jnp.where(jnp.tril(jnp.ones((T, T), bool)), 0.0, -1e9).astype(jnp.float32)

    out = multi_head_attention(x, wqkv_t, wproj_t, cos, sin, mask, num_heads=num_heads)
    out = jax.block_until_ready(out)

    ref = reference_mha(x, wqkv_t, wproj_t, cos, sin, mask, num_heads, head_dim)
    max_err = jnp.max(jnp.abs(out - ref))
    # bf16 MXU operands / bf16 Q,K,V storage + approx reciprocal vs f32 reference.
    assert jnp.allclose(out, ref, atol=3e-2, rtol=3e-2), f"mismatch, max abs err={max_err}"

    print("KERNEL_OK")
</pallas_src>

<mosaic_0001>
module attributes {stable_mosaic.version = 11 : i64} {
  func.func @_qkv_rotary_kernel(%arg0: i32, %arg1: i32, %arg2: memref<1x128x128xf32, #tpu.memory_space<vmem>>, %arg3: memref<128x384xbf16, #tpu.memory_space<vmem>>, %arg4: memref<128x128xf32, #tpu.memory_space<vmem>>, %arg5: memref<128x128xf32, #tpu.memory_space<vmem>>, %arg6: memref<1x128x128xbf16, #tpu.memory_space<vmem>>, %arg7: memref<1x128x128xbf16, #tpu.memory_space<vmem>>, %arg8: memref<1x128x128xbf16, #tpu.memory_space<vmem>>) attributes {dimension_semantics = [#tpu.dimension_semantics<parallel>, #tpu.dimension_semantics<parallel>], iteration_bounds = array<i64: 2, 2>, scalar_prefetch = 0 : i64, scratch_operands = 0 : i64, tpu.core_type = #tpu.core_type<tc>, window_params = [{transform_indices = @transform_0, window_bounds = array<i64: 1, 128, 128>}, {pipeline_mode = #tpu.pipeline_mode<synchronous>, transform_indices = @transform_1, window_bounds = array<i64: 128, 384>}, {transform_indices = @transform_2, window_bounds = array<i64: 128, 128>}, {transform_indices = @transform_3, window_bounds = array<i64: 128, 128>}, {transform_indices = @transform_4, window_bounds = array<i64: 1, 128, 128>}, {transform_indices = @transform_5, window_bounds = array<i64: 1, 128, 128>}, {transform_indices = @transform_6, window_bounds = array<i64: 1, 128, 128>}]} {
    %c0 = arith.constant 0 : index
    %c0_0 = arith.constant 0 : index
    %c0_1 = arith.constant 0 : index
    %0 = vector.load %arg2[%c0, %c0_0, %c0_1] : memref<1x128x128xf32, #tpu.memory_space<vmem>>, vector<1x128x128xf32>
    %1 = vector.shape_cast %0 : vector<1x128x128xf32> to vector<128x128xf32>
    %2 = arith.truncf %1 : vector<128x128xf32> to vector<128x128xbf16>
    %c0_2 = arith.constant 0 : index
    %c0_3 = arith.constant 0 : index
    %3 = vector.load %arg3[%c0_2, %c0_3] : memref<128x384xbf16, #tpu.memory_space<vmem>>, vector<128x384xbf16>
    %cst = arith.constant dense<0.000000e+00> : vector<128x384xf32>
    %4 = tpu.matmul %2, %3, %cst {dimension_numbers = #tpu.dot_dimension_numbers<[1], [0], [0], [1], [0, 0, 1, 1], [], []>} : vector<128x128xbf16>, vector<128x384xbf16>, vector<128x384xf32> -> vector<128x384xf32>
    %5 = vector.extract_strided_slice %4 {offsets = [0, 0], sizes = [128, 128], strides = [1, 1]} : vector<128x384xf32> to vector<128x128xf32>
    %6 = vector.extract_strided_slice %4 {offsets = [0, 128], sizes = [128, 128], strides = [1, 1]} : vector<128x384xf32> to vector<128x128xf32>
    %7 = vector.extract_strided_slice %4 {offsets = [0, 256], sizes = [128, 128], strides = [1, 1]} : vector<128x384xf32> to vector<128x128xf32>
    %c0_4 = arith.constant 0 : index
    %c0_5 = arith.constant 0 : index
    %8 = vector.load %arg4[%c0_4, %c0_5] : memref<128x128xf32, #tpu.memory_space<vmem>>, vector<128x128xf32>
    %c0_6 = arith.constant 0 : index
    %c0_7 = arith.constant 0 : index
    %9 = vector.load %arg5[%c0_6, %c0_7] : memref<128x128xf32, #tpu.memory_space<vmem>>, vector<128x128xf32>
    %10 = tpu.iota {dimensions = array<i32: 1>} : vector<128x128xi32>
    %c2_i32 = arith.constant 2 : i32
    %c0_i32 = arith.constant 0 : i32
    %11 = arith.cmpi eq, %c2_i32, %c0_i32 : i32
    %c1_i32 = arith.constant 1 : i32
    %12 = arith.select %11, %c1_i32, %c2_i32 : i32
    %13 = vector.broadcast %12 : i32 to vector<128x128xi32>
    %14 = arith.remsi %10, %13 : vector<128x128xi32>
    %c0_i32_8 = arith.constant 0 : i32
    %15 = vector.broadcast %c0_i32_8 : i32 to vector<128x128xi32>
    %16 = arith.cmpi ne, %14, %15 : vector<128x128xi32>
    %c0_i32_9 = arith.constant 0 : i32
    %17 = vector.broadcast %c0_i32_9 : i32 to vector<128x128xi32>
    %18 = arith.cmpi slt, %14, %17 : vector<128x128xi32>
    %c0_i32_10 = arith.constant 0 : i32
    %19 = arith.cmpi slt, %12, %c0_i32_10 : i32
    %20 = vector.broadcast %19 : i1 to vector<128x128xi1>
    %21 = vector.broadcast %20 : vector<128x128xi1> to vector<128x128xi1>
    %22 = arith.xori %18, %21 : vector<128x128xi1>
    %23 = arith.andi %22, %16 : vector<128x128xi1>
    %24 = vector.broadcast %12 : i32 to vector<128x128xi32>
    %25 = arith.addi %14, %24 : vector<128x128xi32>
    %26 = arith.select %23, %25, %14 : vector<128x128xi1>, vector<128x128xi32>
    %c0_i32_11 = arith.constant 0 : i32
    %27 = vector.broadcast %c0_i32_11 : i32 to vector<128x128xi32>
    %28 = arith.cmpi eq, %26, %27 : vector<128x128xi32>
    %c127_i32 = arith.constant 127 : i32
    %29 = tpu.dynamic_rotate %5 by %c127_i32 dim 1 : vector<128x128xf32>, i32 -> vector<128x128xf32>
    %c1_i32_12 = arith.constant 1 : i32
    %30 = tpu.dynamic_rotate %5 by %c1_i32_12 dim 1 : vector<128x128xf32>, i32 -> vector<128x128xf32>
    %31 = arith.select %28, %29, %30 : vector<128x128xi1>, vector<128x128xf32>
    %32 = arith.mulf %5, %8 : vector<128x128xf32>
    %33 = arith.mulf %31, %9 : vector<128x128xf32>
    %34 = arith.addf %32, %33 : vector<128x128xf32>
    %cst_13 = arith.constant 0.176776692 : f32
    %35 = vector.broadcast %cst_13 : f32 to vector<128x128xf32>
    %36 = arith.mulf %34, %35 : vector<128x128xf32>
    %37 = arith.truncf %36 : vector<128x128xf32> to vector<128x128xbf16>
    %c0_14 = arith.constant 0 : index
    %c0_15 = arith.constant 0 : index
    %c0_16 = arith.constant 0 : index
    %38 = vector.load %arg6[%c0_14, %c0_15, %c0_16] : memref<1x128x128xbf16, #tpu.memory_space<vmem>>, vector<1x128x128xbf16>
    %39 = vector.shape_cast %38 : vector<1x128x128xbf16> to vector<128x128xbf16>
    %40 = vector.shape_cast %37 : vector<128x128xbf16> to vector<1x128x128xbf16>
    tpu.vector_store %arg6[%c0_14, %c0_15, %c0_16], %40 {strides = array<i32>} : memref<1x128x128xbf16, #tpu.memory_space<vmem>>, vector<1x128x128xbf16>,
    %c127_i32_17 = arith.constant 127 : i32
    %41 = tpu.dynamic_rotate %6 by %c127_i32_17 dim 1 : vector<128x128xf32>, i32 -> vector<128x128xf32>
    %c1_i32_18 = arith.constant 1 : i32
    %42 = tpu.dynamic_rotate %6 by %c1_i32_18 dim 1 : vector<128x128xf32>, i32 -> vector<128x128xf32>
    %43 = arith.select %28, %41, %42 : vector<128x128xi1>, vector<128x128xf32>
    %44 = arith.mulf %6, %8 : vector<128x128xf32>
    %45 = arith.mulf %43, %9 : vector<128x128xf32>
    %46 = arith.addf %44, %45 : vector<128x128xf32>
    %47 = arith.truncf %46 : vector<128x128xf32> to vector<128x128xbf16>
    %c0_19 = arith.constant 0 : index
    %c0_20 = arith.constant 0 : index
    %c0_21 = arith.constant 0 : index
    %48 = vector.load %arg7[%c0_19, %c0_20, %c0_21] : memref<1x128x128xbf16, #tpu.memory_space<vmem>>, vector<1x128x128xbf16>
    %49 = vector.shape_cast %48 : vector<1x128x128xbf16> to vector<128x128xbf16>
    %50 = vector.shape_cast %47 : vector<128x128xbf16> to vector<1x128x128xbf16>
    tpu.vector_store %arg7[%c0_19, %c0_20, %c0_21], %50 {strides = array<i32>} : memref<1x128x128xbf16, #tpu.memory_space<vmem>>, vector<1x128x128xbf16>,
    %51 = arith.truncf %7 : vector<128x128xf32> to vector<128x128xbf16>
    %c0_22 = arith.constant 0 : index
    %c0_23 = arith.constant 0 : index
    %c0_24 = arith.constant 0 : index
    %52 = vector.load %arg8[%c0_22, %c0_23, %c0_24] : memref<1x128x128xbf16, #tpu.memory_space<vmem>>, vector<1x128x128xbf16>
    %53 = vector.shape_cast %52 : vector<1x128x128xbf16> to vector<128x128xbf16>
    %54 = vector.shape_cast %51 : vector<128x128xbf16> to vector<1x128x128xbf16>
    tpu.vector_store %arg8[%c0_22, %c0_23, %c0_24], %54 {strides = array<i32>} : memref<1x128x128xbf16, #tpu.memory_space<vmem>>, vector<1x128x128xbf16>,
    return
  }
  func.func @transform_0(%arg0: i32, %arg1: i32) -> (i32, i32, i32) {
    %c0_i32 = arith.constant 0 : i32
    %c0_i32_0 = arith.constant 0 : i32
    return %arg0, %arg1, %c0_i32 : i32, i32, i32
  }
  func.func @transform_1(%arg0: i32, %arg1: i32) -> (i32, i32) {
    %c0_i32 = arith.constant 0 : i32
    %c0_i32_0 = arith.constant 0 : i32
    %c0_i32_1 = arith.constant 0 : i32
    return %c0_i32, %c0_i32_0 : i32, i32
  }
  func.func @transform_2(%arg0: i32, %arg1: i32) -> (i32, i32) {
    %c0_i32 = arith.constant 0 : i32
    %c0_i32_0 = arith.constant 0 : i32
    return %arg1, %c0_i32 : i32, i32
  }
  func.func @transform_3(%arg0: i32, %arg1: i32) -> (i32, i32) {
    %c0_i32 = arith.constant 0 : i32
    %c0_i32_0 = arith.constant 0 : i32
    return %arg1, %c0_i32 : i32, i32
  }
  func.func @transform_4(%arg0: i32, %arg1: i32) -> (i32, i32, i32) {
    %c0_i32 = arith.constant 0 : i32
    %c0_i32_0 = arith.constant 0 : i32
    return %arg0, %arg1, %c0_i32 : i32, i32, i32
  }
  func.func @transform_5(%arg0: i32, %arg1: i32) -> (i32, i32, i32) {
    %c0_i32 = arith.constant 0 : i32
    %c0_i32_0 = arith.constant 0 : i32
    return %arg0, %arg1, %c0_i32 : i32, i32, i32
  }
  func.func @transform_6(%arg0: i32, %arg1: i32) -> (i32, i32, i32) {
    %c0_i32 = arith.constant 0 : i32
    %c0_i32_0 = arith.constant 0 : i32
    return %arg0, %arg1, %c0_i32 : i32, i32, i32
  }
}

</mosaic_0001>

<bundles_post_ra>
// kernel: tpu_custom_call.1
= control target key start
LH: loop header
LB: loop body
LE: loop exit
PB: predicated region body
PF: predicated region fallthrough
CT: control target
= control target key end

     0   :  { %s3385_s0 = inlined_call_operand.hbm [shape: f32[2,256,128], index: 0, kind: input, shape index: {}]   ;;  %s3386_s1 = inlined_call_operand.hbm [shape: bf16[128,384], index: 1, kind: input, shape index: {}]   ;;  %s3387_s2 = inlined_call_operand.hbm [shape: f32[256,128], index: 2, kind: input, shape index: {}]   ;;  %s3388_s3 = inlined_call_operand.hbm [shape: f32[256,128], index: 3, kind: input, shape index: {}]   ;;  %s3389_s4 = inlined_call_operand.hbm [shape: bf16[2,256,128], index: 4, kind: output, shape index: {0}]   ;;  %s3390_s5 = inlined_call_operand.hbm [shape: bf16[2,256,128], index: 5, kind: output, shape index: {1}]   ;;  %s3391_s6 = inlined_call_operand.hbm [shape: bf16[2,256,128], index: 6, kind: output, shape index: {2}]  }
   0x1   :  { %3414 = sst [smem:[#allocation25_spill]] %s3385_s0 }
   0x2   :  { %3415 = sst [smem:[#allocation26_spill]] %s3386_s1 }
   0x3   :  { %3416 = sst [smem:[#allocation27_spill]] %s3387_s2 }
   0x4   :  { %3417 = sst [smem:[#allocation28_spill]] %s3389_s4 }
   0x5   :  { %3418 = sst [smem:[#allocation29_spill]] %s3390_s5 }
   0x6   :  { %3419 = sst [smem:[#allocation30_spill]] %s3391_s6 }
   0x7   :  { %12 = vsyncpa [#allocation3], 0 }
   0x8   :  { %14 = vsyncpa [#allocation3 + $0x1], 0 }
   0x9   :  { %15 = vsyncpa [#allocation6], 0 }
   0xa   :  { %16 = vsyncpa [#allocation4], 0 }
   0xb   :  { %18 = vsyncpa [#allocation4 + $0x1], 0 }
   0xc   :  { %19 = vsyncpa [#allocation11], 0 }
   0xd   :  { %21 = vsyncpa [#allocation11 + $0x1], 0  ;;  %s2511_s21 = smov 0   ;;  %s2513_s22 = smov 0  }
   0xe   :  { %s2515_s23 = smov 0   ;;  %s2517_s24 = smov 0  }
   0xf   :  { %s2519_s25 = smov 0   ;;  %s2521_s26 = smov 0  }
  0x10   :  { %s2523_s27 = smov 0   ;;  %s2525_s28 = smov 0  }
  0x11   :  { %s2527_s29 = smov 0   ;;  %s2529_s30 = smov 0  }
  0x12   :  { %s2531_s7 = smov 0  }
  0x13 LB: > { %3420 = sst [smem:[#allocation18_spill]] %s2438_s26  ;;  %s36_s8 = sadd.s32 1, %s2450_s29  ;;  %s2458_s7 = sphi %s2531_s7, %s27_s7   ;;  %s2454_s30 = sphi %s2529_s30, %s3474_s30   ;;  %s2450_s29 = sphi %s2527_s29, %s3473_s29   ;;  %s2446_s28 = sphi %s2525_s28, %s3464_s28   ;;  %s2442_s27 = sphi %s2523_s27, %s3472_s27   ;;  %s2438_s26 = sphi %s2521_s26, %s3463_s26   ;;  %s2434_s25 = sphi %s2519_s25, %s3471_s25   ;;  %s2430_s24 = sphi %s2517_s24, %s3470_s24   ;;  %s2426_s23 = sphi %s2515_s23, %s3469_s23   ;;  %s2422_s22 = sphi %s2513_s22, %s3468_s22   ;;  %s2418_s21 = sphi %s2511_s21, %s3467_s21  }
  0x14   : > { %3421 = sst [smem:[#allocation19_spill]] %s2442_s27  ;;  %s39_s9 = sadd.s32 1, %s2454_s30 }
  0x15   : > { %3422 = sst [smem:[#allocation20_spill]] %s2446_s28  ;;  %p37_p0 = scmp.ge.s32.totalorder %s36_s8, 2 }
  0x16   : > { %3423 = sst [smem:[#allocation21_spill]] %s2454_s30  ;;  %s48_s10 = sadd.s32 1, %s2438_s26 }
  0x17   : > { %p3397_p1 = scmp.ne.s32.totalorder %s2438_s26, %s2434_s25  ;;  %p3399_p2 = scmp.eq.s32.totalorder %s2458_s7, 0 }
  0x18   : > { %s3476_s8 = smov (%p37_p0, %s36_s8), 0  ;;  %s3478_s9 = smov (!%p37_p0, %s39_s9), %s2454_s30 }
  0x19   : > { %3424 = sst [smem:[#allocation22_spill]] %s3476_s8  ;;  %s2577_s11 = ssub.s32 %s2450_s29, %s3476_s8 }
  0x1a   : > { %p2584_p3 = por %p3399_p2, %p3397_p1  ;;  %p41_p4 = scmp.ge.s32.totalorder %s3478_s9, 2 }
  0x1b   : > { %p93_p5 = scmp.eq.s32.totalorder %s2577_s11, 0  ;;  %p3398_p6 = scmp.lt.s32.totalorder %s2458_s7, 4 }
  0x1c   : > { %s3480_s9 = smov (%p41_p4, %s3478_s9), 0  ;;  %s255_s13 = sand.u32 1, %s2458_s7  }
  0x1d   : > { %3426 = sst [smem:[#allocation23_spill]] %s3480_s9  ;;  %s257_s14 = sand.u32 1, %s2438_s26  }
  0x1e   : > { %s43_s15 = ssub.s32 %s2454_s30, %s3480_s9  ;;  %s1633_s17 = sshll.u32 %s257_s14, 7 }
  0x1f   : > { %s45_s16 = sor.u32 %s2577_s11, %s43_s15  ;;  %s1634_s18 = sshll.u32 %s2450_s29, 4 }
  0x20   : > { %p46_p7 = scmp.eq.s32.totalorder %s45_s16, 0  ;;  %s1635_s19 = sshll.u32 %s2454_s30, 5 }
  0x21   : > { %s265_s8 = sadd.s32 %s1635_s19, %s1634_s18  ;;  %s259_s6 = scalar_lea.vmem [#allocation2], %s1633_s17 }
  0x22   : > { %s2600_s20 = scalar_select %p46_p7, %s2438_s26, %s48_s10  }
  0x23   : > { %s268_s5 = sshll.u32 %s259_s6, 4  ;;  %s1636_s4 = sshll.u32 %s265_s8, 7  ;;  %s2602_s5 = int_to_ptr.vmem [resolvable:$true] %s268_s5 }
  0x24   : > { %3427 = sst [smem:[#allocation24_spill]] %s2600_s20  ;;  %s3428_s0 = sld [smem:[#allocation25_spill]] }
  0x25   : > { %p2613_p8 = pnand %p3398_p6, %p2584_p3  ;;  %s2617_s6 = scalar_lea.sflag [#allocation3], %s255_s13 }
  0x27   : > { %p2152_p10 = pneg %p2613_p8 }
  0x2a   : > { %s2607_s1 = scalar_lea.hbm %s3428_s0, %s1636_s4  ;;  %s2155_s28 = scalar_lea.hbm %s3428_s0, 8192 }
  0x2b   : > { %s2150_s8 = scalar_lea.hbm %s2607_s1, 2048  ;;  %p2156_p13 = scmp.lt.u32.totalorder %s2607_s1, %s3428_s0 }
  0x2c   : > { %p2151_p9 = scmp.ne.s32.totalorder %s2607_s1, %s2150_s8  ;;  %p2157_p0 = scmp.lt.u32.totalorder %s2155_s28, %s2150_s8 }
  0x2d   : > { %p2159_p4 = scmp.lt.u32.totalorder %s2150_s8, %s2607_s1 }
  0x2e   : > { %p2153_p11 = pnand %p2152_p10, %p2151_p9  ;;  %p2158_p3 = por %p2157_p0, %p2156_p13 }
  0x30   : > { %p2154_p12 = pneg %p2153_p11  ;;  %p2160_p7 = por %p2159_p4, %p2158_p3 }
  0x32   : > { %p2161_p1 = pnand %p2160_p7, %p2154_p12 }
  0x34   : > { %2164 = shalt.err (!%p2161_p1)
}
  0x35   : > { %s2165_s13 = scalar_lea.vmem %s2602_s5, 2048  ;;  %s2460_s15 = smov [#allocation2]  }
  0x36   : > { %p2166_p9 = scmp.ne.s32.totalorder %s2602_s5, %s2165_s13  ;;  %s2170_s16 = sshll.u32 %s2460_s15, 4  ;;  %s2171_s16 = int_to_ptr.vmem [resolvable:$false] %s2170_s16 }
  0x37   : > { %s2172_s17 = scalar_lea.vmem %s2171_s16, 4096  ;;  %p2173_p2 = scmp.lt.s32.totalorder %s2602_s5, %s2171_s16 }
  0x38   : > { %p2168_p11 = pnand %p2166_p9, %p2152_p10  ;;  %p2174_p13 = scmp.lt.s32.totalorder %s2172_s17, %s2165_s13 }
  0x3a   : > { %p2169_p6 = pneg %p2168_p11  ;;  %p2175_p0 = por %p2174_p13, %p2173_p2 }
  0x3c   : > { %p2176_p3 = pnand %p2175_p0, %p2169_p6 }
  0x3e   : > { %2179 = shalt.err (!%p2176_p3)
}
  0x3f   : > { %s3402_s18 = smov 128   ;;  %s3403_s19 = smov 8  }
  0x40   : > { %1999 = dma.hbm_to_vmem [thread:$0]  (!%p2613_p8), %s2607_s1, 2048, %s2602_s5, %s2617_s6, %s3402_s18, %s3402_s18, %s3403_s19  }
  0x41   : > { %s1737_s8 = sshll.u32 %s2450_s29, 11  ;;  %s95_s4 = sadd.s32 1, %s2426_s23 }
  0x42   : > { %p102_p1 = scmp.ne.s32.totalorder %s2426_s23, %s2422_s22  ;;  %p3430_p2 = scmp.eq.s32.totalorder %s2458_s7, 0 }
  0x43   : > { %s2655_s27 = scalar_select %p93_p5, %s2426_s23, %s95_s4  }
  0x44   : > { %p104_p6 = por %p102_p1, %p3430_p2  ;;  %s280_s28 = sand.u32 1, %s2426_s23  }
  0x45   : > { %s2660_s12 = sshll.u32 %s280_s28, 7  ;;  %s3431_s2 = sld [smem:[#allocation27_spill]] }
  0x46   : > { %p3432_p10 = scmp.lt.s32.totalorder %s2458_s7, 4  ;;  %s282_s5 = scalar_lea.vmem [#allocation7], %s2660_s12 }
  0x47   : > { %s289_s11 = sshll.u32 %s282_s5, 4  ;;  %s2676_s11 = int_to_ptr.vmem [resolvable:$true] %s289_s11 }
  0x48   : > { %p2671_p8 = pnand %p3432_p10, %p104_p6 }
  0x4a   : > { %s3433_s1 = scalar_select %p2671_p8, 1, 0 }
  0x4b   : > { %s2667_s10 = scalar_lea.hbm %s3431_s2, %s1737_s8  ;;  %p3400_p12 = pneg %p2671_p8 }
  0x4c   : > { %s2180_s15 = scalar_lea.hbm %s2667_s10, 2048  ;;  %s2185_s4 = scalar_lea.hbm %s3431_s2, 4096 }
  0x4d   : > { %p2181_p5 = scmp.ne.s32.totalorder %s2667_s10, %s2180_s15  ;;  %p2186_p9 = scmp.lt.u32.totalorder %s2667_s10, %s3431_s2 }
  0x4e   : > { %p2187_p11 = scmp.lt.u32.totalorder %s2185_s4, %s2180_s15  ;;  %p2189_p0 = scmp.lt.u32.totalorder %s2180_s15, %s2667_s10 }
  0x4f   : > { %p2183_p4 = pnand %p3400_p12, %p2181_p5 }
  0x50   : > { %p2188_p13 = por %p2187_p11, %p2186_p9 }
  0x51   : > { %p2184_p7 = pneg %p2183_p4 }
  0x52   : > { %p2190_p3 = por %p2189_p0, %p2188_p13 }
  0x54   : > { %p2191_p1 = pnand %p2190_p3, %p2184_p7 }
  0x56   : > { %2194 = shalt.err (!%p2191_p1)
}
  0x57   : > { %s2195_s13 = scalar_lea.vmem %s2676_s11, 2048  ;;  %s2463_s5 = smov [#allocation7]  }
  0x58   : > { %p2196_p2 = scmp.ne.s32.totalorder %s2676_s11, %s2195_s13  ;;  %s2200_s16 = sshll.u32 %s2463_s5, 4  ;;  %s2201_s16 = int_to_ptr.vmem [resolvable:$false] %s2200_s16 }
  0x59   : > { %s2202_s17 = scalar_lea.vmem %s2201_s16, 4096  ;;  %p2203_p5 = scmp.lt.s32.totalorder %s2676_s11, %s2201_s16 }
  0x5a   : > { %p2198_p6 = pnand %p2196_p2, %p3400_p12  ;;  %p2204_p4 = scmp.lt.s32.totalorder %s2202_s17, %s2195_s13 }
  0x5c   : > { %p2199_p10 = pneg %p2198_p6  ;;  %p2205_p9 = por %p2204_p4, %p2203_p5 }
  0x5e   : > { %p2206_p11 = pnand %p2205_p9, %p2199_p10 }
  0x60   : > { %2209 = shalt.err (!%p2206_p11)
}
  0x61   : > { %2002 = dma.hbm_to_vmem [thread:$0]  (!%p2671_p8), %s2667_s10, 2048, %s2676_s11, %s2617_s6, %s3402_s18, %s3402_s18, %s3403_s19  }
  0x62   : > { %s2708_s15 = sadd.s32 4294967295, %s2458_s7   ;;  %s3401_s4 = sadd.s32 4294967294, %s2458_s7  }
  0x63   : > { %p61_p7 = scmp.ne.s32.totalorder %s2434_s25, %s2430_s24  ;;  %p3407_p13 = scmp.eq.s32.totalorder %s2708_s15, 0 }
  0x64   : > { %p108_p0 = scmp.ne.s32.totalorder %s2422_s22, %s2418_s21  ;;  %p160_p3 = scmp.eq.s32.totalorder %s2708_s15, 3 }
  0x65   : > { %p166_p1 = scmp.eq.s32.totalorder %s3401_s4, 3  ;;  %p2721_p2 = por %p3407_p13, %p61_p7 }
  0x66   : > { %p2727_p6 = por %p108_p0, %p3407_p13  ;;  %p3436_p10 = scmp.ne.s32.totalorder %s2438_s26, %s2434_s25 }
  0x67   : > { %s3434_s28 = scalar_select %p2721_p2, 1, 0 }
  0x68   : > { %s3435_s10 = scalar_select %p2727_p6, 1, 0 }
  0x69   : > { %p2734_p5 = por %p160_p3, %p3436_p10  ;;  %p2738_p4 = por %p166_p1, %p61_p7 }
  0x6a   : > { %p1630_p9 = scmp.ge.s32.totalorder %s2458_s7, 1  ;;  %p229_p11 = scmp.lt.s32.totalorder %s2458_s7, 5 }
  0x6b   : > { %s3437_s11 = scalar_select %p2734_p5, 1, 0 }
  0x6c   : > { %s3438_s21 = scalar_select %p2738_p4, 1, 0 }
  0x6d   : > { %p2744_p12 = pnand %p1630_p9, %p229_p11  ;;  %s2464_s13 = smov [#allocation5]  }
  0x6e   : > { %s241_s5 = sshll.u32 %s2464_s13, 4  ;;  %s303_s17 = scalar_lea.vmem [#allocation8], %s2660_s12  ;;  %s2748_s5 = int_to_ptr.vmem [resolvable:$true] %s241_s5 }
  0x6f   : > { %s3439_s14 = scalar_select %p2744_p12, 1, 0 }
  0x70   : > { %p1992_p0 = pneg %p2744_p12  ;;  %s310_s4 = sshll.u32 %s303_s17, 4  ;;  %s2766_s4 = int_to_ptr.vmem [resolvable:$true] %s310_s4 }
  0x71   : > { %s2764_s0 = scalar_lea.hbm %s3388_s3, %s1737_s8  ;;  %s3441_s9 = sld [smem:[#allocation26_spill]] }
  0x72   : > { %p2754_p3 = pnand %p1992_p0, %p3407_p13 }
  0x74   : > { %p2212_p1 = pneg %p2754_p3 }
  0x77   : > { %s2210_s30 = scalar_lea.hbm %s3441_s9, 3072 }
  0x78   : > { %p2211_p7 = scmp.ne.s32.totalorder %s3441_s9, %s2210_s30  ;;  %p2217_p11 = scmp.lt.u32.totalorder %s2210_s30, %s3441_s9 }
  0x7a   : > { %p2213_p10 = pnand %p2212_p1, %p2211_p7 }
  0x7c   : > { %p2214_p9 = pneg %p2213_p10 }
  0x7e   : > { %p2219_p0 = pnand %p2217_p11, %p2214_p9 }
  0x80   : > { %2222 = shalt.err (!%p2219_p0)
}
  0x81   : > { %s2223_s18 = scalar_lea.vmem %s2748_s5, 3072  ;;  %p2231_p6 = scmp.lt.s32.totalorder %s2748_s5, %s2748_s5 }
  0x82   : > { %p2224_p13 = scmp.ne.s32.totalorder %s2748_s5, %s2223_s18  ;;  %p2232_p2 = scmp.lt.s32.totalorder %s2223_s18, %s2223_s18 }
  0x84   : > { %p2226_p4 = pnand %p2224_p13, %p2212_p1  ;;  %p2233_p12 = por %p2232_p2, %p2231_p6 }
  0x86   : > { %p2227_p5 = pneg %p2226_p4 }
  0x88   : > { %p2234_p8 = pnand %p2233_p12, %p2227_p5 }
  0x8a   : > { %2237 = shalt.err (!%p2234_p8)
}
  0x8b   : > { %s2465_s2 = smov 192   ;;  %s2466_s26 = smov 12  }
  0x8c   : > { %1995 = dma.hbm_to_vmem [thread:$0]  (!%p2754_p3), %s3441_s9, 3072, %s2748_s5, [#allocation6], %s2465_s2, %s2465_s2, %s2466_s26  }
  0x8d   : > { %s2238_s19 = scalar_lea.hbm %s2764_s0, 2048  ;;  %p3442_p4 = scmp.ne.s32.totalorder %s3433_s1, 0 }
  0x8e   : > { %p2239_p13 = scmp.ne.s32.totalorder %s2764_s0, %s2238_s19  ;;  %s2243_s12 = scalar_lea.hbm %s3388_s3, 4096 }
  0x8f   : > { %p3443_p2 = pneg %p3442_p4  ;;  %p2244_p6 = scmp.lt.u32.totalorder %s2764_s0, %s3388_s3 }
  0x90   : > { %p2245_p5 = scmp.lt.u32.totalorder %s2243_s12, %s2238_s19  ;;  %p2247_p1 = scmp.lt.u32.totalorder %s2238_s19, %s2764_s0 }
  0x91   : > { %p2241_p12 = pnand %p2239_p13, %p3443_p2 }
  0x92   : > { %p2246_p7 = por %p2245_p5, %p2244_p6 }
  0x93   : > { %p2242_p8 = pneg %p2241_p12 }
  0x94   : > { %p2248_p10 = por %p2247_p1, %p2246_p7 }
  0x96   : > { %p2249_p9 = pnand %p2248_p10, %p2242_p8 }
  0x98   : > { %2252 = shalt.err (!%p2249_p9)
}
  0x99   : > { %s2253_s5 = scalar_lea.vmem %s2766_s4, 2048  ;;  %p3444_p11 = pmov %p3443_p2 }
  0x9a   : > { %p2254_p3 = scmp.ne.s32.totalorder %s2766_s4, %s2253_s5  ;;  %s2467_s16 = smov [#allocation8]  }
  0x9b   : > { %s2258_s2 = sshll.u32 %s2467_s16, 4  ;;  %s2259_s2 = int_to_ptr.vmem [resolvable:$false] %s2258_s2 }
  0x9c   : > { %p2256_p0 = pnand %p2254_p3, %p3444_p11  ;;  %s2260_s26 = scalar_lea.vmem %s2259_s2, 4096 }
  0x9d   : > { %p2261_p2 = scmp.lt.s32.totalorder %s2766_s4, %s2259_s2  ;;  %p2262_p12 = scmp.lt.s32.totalorder %s2260_s26, %s2253_s5 }
  0x9e   : > { %p2257_p13 = pneg %p2256_p0 }
  0x9f   : > { %p2263_p6 = por %p2262_p12, %p2261_p2 }
  0xa1   : > { %p2264_p5 = pnand %p2263_p6, %p2257_p13 }
  0xa3   : > { %2267 = shalt.err (!%p2264_p5)
}
  0xa4   : > { %s3445_s30 = smov 8   ;;  %s3446_s20 = smov 128  }
  0xa5   : > { %2005 = dma.hbm_to_vmem [thread:$0]  (!%p3442_p4), %s2764_s0, 2048, %s2766_s4, %s2617_s6, %s3446_s20, %s3446_s20, %s3445_s30  }
  0xa6   : > { %p3447_p8 = scmp.ne.s32.totalorder %s3439_s14, 0 }
  0xa7   : > { %s324_s19 = sand.u32 (!%p3447_p8), 1, %s2708_s15   ;;  %s2820_s8 = sand.u32 (!%p3447_p8), 1, %s2434_s25  }
  0xa8   : > { %322 = sbr.rel (%p3447_p8) target bundleno = 732 (0x2dc), region = 36  ;;  %s1644_s13 = sshll.u32 (!%p3447_p8), %s2820_s8, 7 }
  0xa9   : > { %s325_s1 = scalar_lea.sflag (!%p3447_p8), [#allocation3], %s324_s19  ;;  %s2825_s12 = scalar_lea.vmem (!%p3447_p8), [#allocation2], %s1644_s13 }
  0xaa   : > { %p3448_p7 = scmp.ne.s32.totalorder (!%p3447_p8), %s3434_s28, 0 }
  0xaf   : > { %2397 = dma.done.wait (%p3448_p7), %s325_s1, 2048  }
  0xb0   : > { %2399 = vsyncadd (%p3448_p7), %s325_s1, 4294965248  ;;  %p3449_p4 = scmp.eq.s32.totalorder %s2708_s15, 0 }
  0xb2   : > { %2401 = dma.done.wait (%p3449_p4), [#allocation6], 3072   ;;  %p3450_p1 = pmov %p3449_p4 }
  0xb3   : > { %s339_s0 = sand.u32 1, %s2422_s22   ;;  %p3451_p10 = scmp.ne.s32.totalorder %s3435_s10, 0 }
  0xb4   : > { %2403 = vsyncadd (%p3450_p1), [#allocation6], 4294964224  ;;  %s2836_s6 = sshll.u32 %s339_s0, 7 }
  0xb5   : > { %s2839_s4 = scalar_lea.vmem [#allocation7], %s2836_s6 }
  0xb6   : > { %2405 = dma.done.wait (%p3451_p10), %s325_s1, 4096  }
  0xb7   : > { %2407 = vsyncadd (%p3451_p10), %s325_s1, 4294963200  ;;  %v2468_v0 = vmov 0   ;;  %v2118_v1 = vld [vmem:[#allocation5 + $0x4] ss:$12 sps:$4 sm:$0xff]   ;;  %v2120_v2 = vld [vmem:[#allocation5] ss:$12 sps:$4 sm:$0xff]  }
  0xb8   : > { %622 = vmatprep.mubr.bf16.mxu0 %v2468_v0  ;;  %590 = vmatprep.subr.bf16.mxu0 %v2118_v1  ;;  %v2121_v3 = vld [vmem:[#allocation5 + $0x1c] ss:$12 sps:$4 sm:$0xff]   ;;  %v2123_v4 = vld [vmem:[#allocation5 + $0x18] ss:$12 sps:$4 sm:$0xff]   ;;  %v2124_v5 = vld [vmem:[#allocation5 + $0x34] ss:$12 sps:$4 sm:$0xff]  }
  0xb9   : > { %591 = vmatpush1.bf16.msra.mxu0 %v2120_v2  ;;  %v2126_v6 = vld [vmem:[#allocation5 + $0x30] ss:$12 sps:$4 sm:$0xff]   ;;  %v2127_v7 = vld [vmem:[#allocation5 + $0x4c] ss:$12 sps:$4 sm:$0xff]   ;;  %v406_v8 = vld [vmem:[%s2825_s12] sm:$0xff]  ;;  %s2469_s28 = smov 127  }
  0xba   : > { %592 = vmatprep.subr.bf16.mxu0 %v2121_v3  ;;  %v2129_v9 = vld [vmem:[#allocation5 + $0x48] ss:$12 sps:$4 sm:$0xff]   ;;  %v2130_v11 = vld [vmem:[#allocation5 + $0x64] ss:$12 sps:$4 sm:$0xff]   ;;  %v2132_v13 = vld [vmem:[#allocation5 + $0x60] ss:$12 sps:$4 sm:$0xff]  }
  0xbb   : > { %v407_v10 = vld [vmem:[%s2825_s12 + $0x8] sm:$0xff]  ;;  %v2135_v17 = vld [vmem:[#allocation5 + $0x78] ss:$12 sps:$4 sm:$0xff]   ;;  %v2136_v18 = vld [vmem:[#allocation5 + $0x94] ss:$12 sps:$4 sm:$0xff]   ;;  %s2470_s10 = smov 1  }
  0xbc   : > { %v422_v12 = vpack.c.bf16 %v407_v10, %v406_v8  ;;  %v2133_v14 = vld [vmem:[#allocation5 + $0x7c] ss:$12 sps:$4 sm:$0xff]   ;;  %v2143_v16 = vld [vmem:[#allocation5 + $0x20] ss:$12 sps:$4 sm:$0xff]   ;;  %v2144_v19 = vld [vmem:[#allocation5 + $0x38] ss:$12 sps:$4 sm:$0xff]  }
  0xbd   : > { %593 = vmatpush1.bf16.msra.mxu0 %v2123_v4  ;;  %v2142_v15 = vld [vmem:[#allocation5 + $0x8] ss:$12 sps:$4 sm:$0xff]   ;;  %v2138_v20 = vld [vmem:[#allocation5 + $0x90] ss:$12 sps:$4 sm:$0xff]   ;;  %v2139_v21 = vld [vmem:[#allocation5 + $0xac] ss:$12 sps:$4 sm:$0xff]  }
  0xbe   : > { %594 = vmatprep.subr.bf16.mxu0 %v2124_v5  ;;  %1960 = vmatprep.mubr.bf16.mxu1 %v422_v12  ;;  %v2145_v22 = vld [vmem:[#allocation5 + $0x50] ss:$12 sps:$4 sm:$0xff]   ;;  %v2141_v23 = vld [vmem:[#allocation5 + $0xa8] ss:$12 sps:$4 sm:$0xff]   ;;  %v2147_v25 = vld [vmem:[#allocation5 + $0x80] ss:$12 sps:$4 sm:$0xff]  }
  0xbf   : > { %1944 = vmatprep.subr.bf16.mxu1 %v2142_v15  ;;  %v2146_v24 = vld [vmem:[#allocation5 + $0x68] ss:$12 sps:$4 sm:$0xff]   ;;  %v409_v27 = vld [vmem:[%s2825_s12 + $0x18] sm:$0xff]  ;;  %v410_v30 = vld [vmem:[%s2825_s12 + $0x20] sm:$0xff]  ;;  %s3028_s14 = sshll.u32 %s2820_s8, 6  ;;  %s3076_s18 = scalar_lea.vmem [#allocation8], %s2836_s6 }
  0xc0   : > { %1945 = vmatpush3.bf16.msra.mxu1 %v2142_v15  ;;  %v408_v26 = vld [vmem:[%s2825_s12 + $0x10] sm:$0xff]  ;;  %v2148_v28 = vld [vmem:[#allocation5 + $0x98] ss:$12 sps:$4 sm:$0xff]   ;;  %v411_v31 = vld [vmem:[%s2825_s12 + $0x28] sm:$0xff]  ;;  %s3033_s17 = scalar_lea.vmem [#allocation12], %s3028_s14  ;;  %s3101_s5 = scalar_lea.vmem [#allocation10], %s3028_s14 }
  0xc1   : > { %595 = vmatpush1.bf16.msra.mxu0 %v2126_v6  ;;  %1946 = vmatprep.subr.bf16.mxu1 %v2143_v16  ;;  %v423_v29 = vpack.c.bf16 %v409_v27, %v408_v26  ;;  %v424_v32 = vpack.c.bf16 %v411_v31, %v410_v30  ;;  %v412_v33 = vld [vmem:[%s2825_s12 + $0x30] sm:$0xff]  ;;  %v413_v34 = vld [vmem:[%s2825_s12 + $0x38] sm:$0xff]  ;;  %v414_v36 = vld [vmem:[%s2825_s12 + $0x40] sm:$0xff]  ;;  %s3113_s16 = scalar_lea.vmem [#allocation9], %s3028_s14  ;;  %s3454_s2 = sld [smem:[#allocation19_spill]] }
  0xc2   : > { %596 = vmatprep.subr.bf16.mxu0 %v2127_v7  ;;  %v425_v35 = vpack.c.bf16 %v413_v34, %v412_v33  ;;  %v415_v37 = vld [vmem:[%s2825_s12 + $0x48] sm:$0xff]  ;;  %v416_v39 = vld [vmem:[%s2825_s12 + $0x50] sm:$0xff]  ;;  %v417_v40 = vld [vmem:[%s2825_s12 + $0x58] sm:$0xff]  ;;  %s3455_s26 = sld [smem:[#allocation20_spill]]  ;;  %s1360_s14 = scalar_lea.sflag [#allocation4], %s2820_s8 }
  0xc3   : > { %v426_v38 = vpack.c.bf16 %v415_v37, %v414_v36  ;;  %v427_v41 = vpack.c.bf16 %v417_v40, %v416_v39  ;;  %v418_v42 = vld [vmem:[%s2825_s12 + $0x60] sm:$0xff]  ;;  %v419_v43 = vld [vmem:[%s2825_s12 + $0x68] sm:$0xff]  ;;  %v420_v45 = vld [vmem:[%s2825_s12 + $0x70] sm:$0xff]  ;;  %p3457_p3 = scmp.ne.s32.totalorder %s3437_s11, 0 }
  0xc4   : > { %1947 = vmatpush3.bf16.msra.mxu1 %v2143_v16  ;;  %v428_v44 = vpack.c.bf16 %v419_v43, %v418_v42  ;;  %v421_v46 = vld [vmem:[%s2825_s12 + $0x78] sm:$0xff]  ;;  %s1385_s12 = sshll.u32 %s3113_s16, 4  ;;  %s3237_s12 = int_to_ptr.vmem [resolvable:$true] %s1385_s12 }
  0xc5   : > { %597 = vmatpush1.bf16.msra.mxu0 %v2129_v9  ;;  %1948 = vmatprep.subr.bf16.mxu1 %v2144_v19  ;;  %v429_v47 = vpack.c.bf16 %v421_v46, %v420_v45  ;;  %v2149_v48 = vld [vmem:[#allocation5 + $0xb0] ss:$12 sps:$4 sm:$0xff]  }
  0xc6   : > { %598 = vmatprep.subr.bf16.mxu0 %v2130_v11 }
  0xc7   : > { %s1726_s30 = sshll.u32 %s3454_s2, 4  ;;  %s2471_s2 = smov [#allocation9]  }
  0xc8   : > { %1949 = vmatpush3.bf16.msra.mxu1 %v2144_v19  ;;  %s1727_s20 = sshll.u32 %s3455_s26, 5  ;;  %s2272_s26 = sshll.u32 %s2471_s2, 4  ;;  %s2273_s26 = int_to_ptr.vmem [resolvable:$false] %s2272_s26 }
  0xc9   : > { %599 = vmatpush1.bf16.msra.mxu0 %v2132_v13  ;;  %1950 = vmatprep.subr.bf16.mxu1 %v2145_v22  ;;  %s1382_s13 = sadd.s32 %s1727_s20, %s1726_s30  ;;  %s2274_s30 = scalar_lea.vmem %s2273_s26, 2048 }
  0xca   : > { %600 = vmatprep.subr.bf16.mxu0 %v2133_v14  ;;  %s3226_s1 = sshll.u32 %s1382_s13, 6  ;;  %p2275_p13 = scmp.lt.s32.totalorder %s3237_s12, %s2273_s26 }
  0xcc   : > { %1951 = vmatpush3.bf16.msra.mxu1 %v2145_v22 }
  0xcd   : > { %601 = vmatpush1.bf16.msra.mxu0 %v2135_v17  ;;  %1952 = vmatprep.subr.bf16.mxu1 %v2146_v24 }
  0xce   : > { %602 = vmatprep.subr.bf16.mxu0 %v2136_v18 }
  0xd0   : > { %1953 = vmatpush3.bf16.msra.mxu1 %v2146_v24 }
  0xd1   : > { %603 = vmatpush1.bf16.msra.mxu0 %v2138_v20  ;;  %1954 = vmatprep.subr.bf16.mxu1 %v2147_v25 }
  0xd2   : > { %604 = vmatprep.subr.bf16.mxu0 %v2139_v21 }
  0xd4   : > { %1955 = vmatpush3.bf16.msra.mxu1 %v2147_v25 }
  0xd5   : > { %605 = vmatpush1.bf16.msra.mxu0 %v2141_v23  ;;  %1956 = vmatprep.subr.bf16.mxu1 %v2148_v28 }
  0xd8   : > { %623 = vmatmul.mubr.bf16.vlgmr.msra.gmra.mrb[0].mxu0 %v422_v12  ;;  %1957 = vmatpush3.bf16.msra.mxu1 %v2148_v28 }
  0xd9   : > { %632 = vmatprep.mubr.bf16.mxu0 %v2468_v0  ;;  %1958 = vmatprep.subr.bf16.mxu1 %v2149_v48 }
  0xdc   : > { %1959 = vmatpush3.bf16.msra.mxu1 %v2149_v48 }
  0xdf   : > { %1961 = vmatmul.mubr.bf16.vlgmr.msra.gmra.mrb[0].mxu1 %v423_v29 }
  0xe0   : > { %633 = vmatmul.mubr.bf16.gmra.mrb[4].mxu0 %v423_v29  ;;  %1964 = vmatprep.mubr.bf16.mxu1 %v424_v32 }
  0xe1   : > { %642 = vmatprep.mubr.bf16.mxu0 %v2468_v0 }
  0xe7   : > { %1965 = vmatmul.mubr.bf16.gmra.mrb[4].mxu1 %v425_v35 }
  0xe8   : > { %643 = vmatmul.mubr.bf16.gmra.mrb[8].mxu0 %v424_v32  ;;  %1968 = vmatprep.mubr.bf16.mxu1 %v426_v38 }
  0xe9   : > { %652 = vmatprep.mubr.bf16.mxu0 %v2468_v0 }
  0xef   : > { %1969 = vmatmul.mubr.bf16.gmra.mrb[8].mxu1 %v427_v41 }
  0xf0   : > { %653 = vmatmul.mubr.bf16.gmra.mrb[12].mxu0 %v425_v35  ;;  %1972 = vmatprep.mubr.bf16.mxu1 %v428_v44  ;;  %v832_v35 = vlaneseq }
  0xf1   : > { %662 = vmatprep.mubr.bf16.mxu0 %v2468_v0 }
  0xf2   : > { %v833_v39 = vand.u32 127, %v832_v35 }
  0xf4   : > { %v838_v45 = vand.u32 1, %v833_v39 }
  0xf6   : > { %vm3069_vm0 = vcmp.eq.s32.totalorder %v838_v45, 0  ;;  %v803_v45 = vld [vmem:[%s2839_s4 + $0x18] sm:$0xff] }
  0xf7   : > { %1973 = vmatmul.mubr.bf16.gmra.mrb[12].mxu1 %v429_v47 }
  0xf8   : > { %663 = vmatmul.mubr.bf16.gmra.mrb[16].mxu0 %v426_v38 }
  0xf9   : > { %672 = vmatprep.mubr.bf16.mxu0 %v2468_v0 }
 0x100   : > { %673 = vmatmul.mubr.bf16.gmra.mrb[20].mxu0 %v427_v41 }
 0x101   : > { %682 = vmatprep.mubr.bf16.mxu0 %v2468_v0 }
 0x108   : > { %683 = vmatmul.mubr.bf16.gmra.mrb[24].mxu0 %v428_v44 }
 0x109   : > { %692 = vmatprep.mubr.bf16.mxu0 %v2468_v0 }
 0x110   : > { %693 = vmatmul.mubr.bf16.gmra.mrb[28].mxu0 %v429_v47 }
 0x1ab   : > { %v2869_v49 = vpop.f32.mrb[0].mxu0 }
 0x1ac   : > { %847 = vrot.lane.b32.xlu0 %v2869_v49, %s2469_s28  ;;  %v2873_v50 = vpop.f32.mrb[1].mxu0 }
 0x1ad   : > { %v2875_v51 = vpop.f32.mrb[2].mxu0 }
 0x1ae   : > { %881 = vrot.lane.b32.xlu1 %v2875_v51, %s2470_s10  ;;  %v2879_v52 = vpop.f32.mrb[3].mxu0 }
 0x1b0   : > { %879 = vrot.lane.b32.xlu0 %v2869_v49, %s2470_s10 }
 0x1b2   : > { %1073 = vrot.lane.b32.xlu1 %v2879_v52, %s2469_s28  ;;  %v1962_v17 = vpop.f32.mrb[0].mxu1 }
 0x1b3   : > { %v2885_v53 = vpop.f32.mrb[4].mxu0  ;;  %v737_v18 = vpop.f32.mrb[1].mxu1 }
 0x1b4   : > { %1071 = vrot.lane.b32.xlu0 %v2873_v50, %s2469_s28  ;;  %v2889_v54 = vpop.f32.mrb[5].mxu0  ;;  %v1963_v19 = vpop.f32.mrb[2].mxu1 }
 0x1b5   : > { %v2891_v55 = vpop.f32.mrb[6].mxu0  ;;  %v740_v20 = vpop.f32.mrb[3].mxu1  ;;  %v1875_v21 = vpack.c.bf16 %v1963_v19, %v1962_v17 }
 0x1b6   : > { %1105 = vrot.lane.b32.xlu1 %v2879_v52, %s2470_s10  ;;  %v2895_v56 = vpop.f32.mrb[7].mxu0  ;;  %v1870_v22 = vpack.c.bf16 %v740_v20, %v737_v18  ;;  %v817_v18 = vld [vmem:[%s3076_s18 + $0x8] sm:$0xff]  ;;  %v800_v20 = vld [vmem:[%s2839_s4] sm:$0xff] }
 0x1b7   : > { %1921 = vst [vmem:[%s3033_s17 + $0x8] sm:$0xff] %v1875_v21   ;;  %v801_v21 = vld [vmem:[%s2839_s4 + $0x8] sm:$0xff] }
 0x1b8   : > { %1103 = vrot.lane.b32.xlu0 %v2873_v50, %s2470_s10  ;;  %1871 = vst [vmem:[%s3033_s17] sm:$0xff] %v1870_v22   ;;  %v816_v22 = vld [vmem:[%s3076_s18] sm:$0xff] }
 0x1ba   : > { %851 = vrot.lane.b32.xlu1 %v2885_v53, %s2469_s28  ;;  %v1966_v23 = vpop.f32.mrb[4].mxu1 }
 0x1bb   : > { %v2901_v57 = vpop.f32.mrb[8].mxu0  ;;  %v753_v24 = vpop.f32.mrb[5].mxu1 }
 0x1bc   : > { %849 = vrot.lane.b32.xlu0 %v2875_v51, %s2469_s28  ;;  %v2905_v58 = vpop.f32.mrb[9].mxu0  ;;  %v1967_v25 = vpop.f32.mrb[6].mxu1 }
 0x1bd   : > { %v2907_v59 = vpop.f32.mrb[10].mxu0  ;;  %v756_v26 = vpop.f32.mrb[7].mxu1  ;;  %v1885_v27 = vpack.c.bf16 %v1967_v25, %v1966_v23 }
 0x1be   : > { %853 = vrot.lane.b32.xlu1 %v2891_v55, %s2469_s28  ;;  %v2911_v60 = vpop.f32.mrb[11].mxu0  ;;  %v1880_v28 = vpack.c.bf16 %v756_v26, %v753_v24 }
 0x1bf   : > { %1923 = vst [vmem:[%s3033_s17 + $0x18] sm:$0xff] %v1885_v27  }
 0x1c0   : > { %883 = vrot.lane.b32.xlu0 %v2885_v53, %s2470_s10  ;;  %1922 = vst [vmem:[%s3033_s17 + $0x10] sm:$0xff] %v1880_v28   ;;  %v1151_v28 = vmul.f32 %v800_v20, %v2873_v50 }
 0x1c2   : > { %885 = vrot.lane.b32.xlu1 %v2891_v55, %s2470_s10  ;;  %v1970_v29 = vpop.f32.mrb[8].mxu1 }
 0x1c3   : > { %v2917_v61 = vpop.f32.mrb[12].mxu0  ;;  %v769_v30 = vpop.f32.mrb[9].mxu1 }
 0x1c4   : > { %1075 = vrot.lane.b32.xlu0 %v2889_v54, %s2469_s28  ;;  %v2921_v62 = vpop.f32.mrb[13].mxu0  ;;  %v1971_v31 = vpop.f32.mrb[10].mxu1 }
 0x1c5   : > { %v2923_v63 = vpop.f32.mrb[14].mxu0  ;;  %v772_v32 = vpop.f32.mrb[11].mxu1  ;;  %v1895_v33 = vpack.c.bf16 %v1971_v31, %v1970_v29  ;;  %v1152_v29 = vmul.f32 %v801_v21, %v2879_v52 }
 0x1c6   : > { %1077 = vrot.lane.b32.xlu1 %v2895_v56, %s2469_s28  ;;  %v2927_v0 = vpop.f32.mrb[15].mxu0  ;;  %v1890_v34 = vpack.c.bf16 %v772_v32, %v769_v30 }
 0x1c7   : > { %1925 = vst [vmem:[%s3033_s17 + $0x28] sm:$0xff] %v1895_v33   ;;  %v927_v33 = vmul.f32 %v800_v20, %v2869_v49 }
 0x1c8   : > { %1107 = vrot.lane.b32.xlu0 %v2889_v54, %s2470_s10  ;;  %1924 = vst [vmem:[%s3033_s17 + $0x20] sm:$0xff] %v1890_v34  }
 0x1ca   : > { %1109 = vrot.lane.b32.xlu1 %v2895_v56, %s2470_s10  ;;  %v1974_v36 = vpop.f32.mrb[12].mxu1 }
 0x1cb   : > { %v2933_v1 = vpop.f32.mrb[16].mxu0  ;;  %v785_v37 = vpop.f32.mrb[13].mxu1 }
 0x1cc   : > { %855 = vrot.lane.b32.xlu0 %v2901_v57, %s2469_s28  ;;  %v2937_v2 = vpop.f32.mrb[17].mxu0  ;;  %v1975_v40 = vpop.f32.mrb[14].mxu1 }
 0x1cd   : > { %v2939_v3 = vpop.f32.mrb[18].mxu0  ;;  %v788_v41 = vpop.f32.mrb[15].mxu1  ;;  %v1905_v43 = vpack.c.bf16 %v1975_v40, %v1974_v36 }
 0x1ce   : > { %857 = vrot.lane.b32.xlu1 %v2907_v59, %s2469_s28  ;;  %v2943_v4 = vpop.f32.mrb[19].mxu0  ;;  %v1900_v44 = vpack.c.bf16 %v788_v41, %v785_v37  ;;  %v802_v41 = vld [vmem:[%s2839_s4 + $0x10] sm:$0xff] }
 0x1cf   : > { %1927 = vst [vmem:[%s3033_s17 + $0x38] sm:$0xff] %v1905_v43   ;;  %v818_v43 = vld [vmem:[%s3076_s18 + $0x10] sm:$0xff] }
 0x1d0   : > { %887 = vrot.lane.b32.xlu0 %v2901_v57, %s2470_s10  ;;  %1926 = vst [vmem:[%s3033_s17 + $0x30] sm:$0xff] %v1900_v44  }
 0x1d2   : > { %889 = vrot.lane.b32.xlu1 %v2907_v59, %s2470_s10 }
 0x1d3   : > { %v2949_v5 = vpop.f32.mrb[20].mxu0 }
 0x1d4   : > { %1079 = vrot.lane.b32.xlu0 %v2905_v58, %s2469_s28  ;;  %v2953_v6 = vpop.f32.mrb[21].mxu0 }
 0x1d5   : > { %v2955_v7 = vpop.f32.mrb[22].mxu0 }
 0x1d6   : > { %1081 = vrot.lane.b32.xlu1 %v2911_v60, %s2469_s28  ;;  %v2959_v8 = vpop.f32.mrb[23].mxu0 }
 0x1d8   : > { %1111 = vrot.lane.b32.xlu0 %v2905_v58, %s2470_s10 }
 0x1da   : > { %1113 = vrot.lane.b32.xlu1 %v2911_v60, %s2470_s10 }
 0x1db   : > { %v2965_v9 = vpop.f32.mrb[24].mxu0 }
 0x1dc   : > { %859 = vrot.lane.b32.xlu0 %v2917_v61, %s2469_s28  ;;  %v2969_v10 = vpop.f32.mrb[25].mxu0 }
 0x1dd   : > { %v2971_v11 = vpop.f32.mrb[26].mxu0 }
 0x1de   : > { %861 = vrot.lane.b32.xlu1 %v2923_v63, %s2469_s28  ;;  %v2975_v12 = vpop.f32.mrb[27].mxu0 }
 0x1e0   : > { %891 = vrot.lane.b32.xlu0 %v2917_v61, %s2470_s10 }
 0x1e2   : > { %893 = vrot.lane.b32.xlu1 %v2923_v63, %s2470_s10 }
 0x1e3   : > { %v2981_v13 = vpop.f32.mrb[28].mxu0 }
 0x1e4   : > { %1083 = vrot.lane.b32.xlu0 %v2921_v62, %s2469_s28  ;;  %v2985_v14 = vpop.f32.mrb[29].mxu0 }
 0x1e5   : > { %v2987_v15 = vpop.f32.mrb[30].mxu0 }
 0x1e6   : > { %1085 = vrot.lane.b32.xlu1 %v2927_v0, %s2469_s28  ;;  %v2991_v16 = vpop.f32.mrb[31].mxu0 }
 0x1e8   : > { %1115 = vrot.lane.b32.xlu0 %v2921_v62, %s2470_s10 }
 0x1ea   : > { %1117 = vrot.lane.b32.xlu1 %v2927_v0, %s2470_s10 }
 0x1ec   : > { %863 = vrot.lane.b32.xlu0 %v2933_v1, %s2469_s28 }
 0x1ee   : > { %865 = vrot.lane.b32.xlu1 %v2939_v3, %s2469_s28 }
 0x1f0   : > { %895 = vrot.lane.b32.xlu0 %v2933_v1, %s2470_s10 }
 0x1f2   : > { %897 = vrot.lane.b32.xlu1 %v2939_v3, %s2470_s10 }
 0x1f4   : > { %1087 = vrot.lane.b32.xlu0 %v2937_v2, %s2469_s28 }
 0x1f6   : > { %1089 = vrot.lane.b32.xlu1 %v2943_v4, %s2469_s28 }
 0x1f8   : > { %1119 = vrot.lane.b32.xlu0 %v2937_v2, %s2470_s10 }
 0x1fa   : > { %1121 = vrot.lane.b32.xlu1 %v2943_v4, %s2470_s10 }
 0x1fc   : > { %867 = vrot.lane.b32.xlu0 %v2949_v5, %s2469_s28 }
 0x1fe   : > { %869 = vrot.lane.b32.xlu1 %v2955_v7, %s2469_s28 }
 0x200   : > { %899 = vrot.lane.b32.xlu0 %v2949_v5, %s2470_s10 }
 0x202   : > { %901 = vrot.lane.b32.xlu1 %v2955_v7, %s2470_s10 }
 0x204   : > { %1091 = vrot.lane.b32.xlu0 %v2953_v6, %s2469_s28 }
 0x206   : > { %1093 = vrot.lane.b32.xlu1 %v2959_v8, %s2469_s28 }
 0x208   : > { %1123 = vrot.lane.b32.xlu0 %v2953_v6, %s2470_s10 }
 0x20a   : > { %1125 = vrot.lane.b32.xlu1 %v2959_v8, %s2470_s10 }
 0x20c   : > { %871 = vrot.lane.b32.xlu0 %v2965_v9, %s2469_s28 }
 0x20e   : > { %873 = vrot.lane.b32.xlu1 %v2971_v11, %s2469_s28 }
 0x210   : > { %903 = vrot.lane.b32.xlu0 %v2965_v9, %s2470_s10 }
 0x212   : > { %905 = vrot.lane.b32.xlu1 %v2971_v11, %s2470_s10 }
 0x214   : > { %1095 = vrot.lane.b32.xlu0 %v2969_v10, %s2469_s28 }
 0x216   : > { %1097 = vrot.lane.b32.xlu1 %v2975_v12, %s2469_s28 }
 0x218   : > { %1127 = vrot.lane.b32.xlu0 %v2969_v10, %s2470_s10 }
 0x21a   : > { %1129 = vrot.lane.b32.xlu1 %v2975_v12, %s2470_s10 }
 0x21c   : > { %875 = vrot.lane.b32.xlu0 %v2981_v13, %s2469_s28 }
 0x21e   : > { %v848_v38 = vpop.permute.xlu0 %847  ;;  %877 = vrot.lane.b32.xlu1 %v2987_v15, %s2469_s28 }
 0x220   : > { %v882_v42 = vpop.permute.xlu1 %881  ;;  %907 = vrot.lane.b32.xlu0 %v2981_v13, %s2470_s10 }
 0x222   : > { %v880_v46 = vpop.permute.xlu0 %879  ;;  %909 = vrot.lane.b32.xlu1 %v2987_v15, %s2470_s10 }
 0x223   : > { %v911_v23 = vsel %vm3069_vm0, %v848_v38, %v880_v46  ;;  %v928_v38 = vmul.f32 %v801_v21, %v2875_v51  ;;  %v929_v51 = vmul.f32 %v802_v41, %v2885_v53  ;;  %v930_v21 = vmul.f32 %v803_v45, %v2891_v55 }
 0x224   : > { %v1074_v47 = vpop.permute.xlu1 %1073  ;;  %1099 = vrot.lane.b32.xlu0 %v2985_v14, %s2469_s28  ;;  %v943_v30 = vmul.f32 %v911_v23, %v816_v22 }
 0x226   : > { %v1072_v17 = vpop.permute.xlu0 %1071  ;;  %1101 = vrot.lane.b32.xlu1 %v2991_v16, %s2469_s28  ;;  %v959_v50 = vadd.f32 %v943_v30, %v927_v33 }
 0x228   : > { %v1106_v19 = vpop.permute.xlu1 %1105  ;;  %1131 = vrot.lane.b32.xlu0 %v2985_v14, %s2470_s10 }
 0x229   : > { %v1136_v24 = vsel %vm3069_vm0, %v1074_v47, %v1106_v19  ;;  %v975_v47 = vmul.f32 0.17677669, %v959_v50 }
 0x22a   : > { %v1168_v25 = vmul.f32 %v1136_v24, %v817_v18  ;;  %v1104_v26 = vpop.permute.xlu0 %1103  ;;  %1133 = vrot.lane.b32.xlu1 %v2991_v16, %s2470_s10  ;;  %s1403_s10 = sshll.u32 %s3101_s5, 4  ;;  %s3281_s10 = int_to_ptr.vmem [resolvable:$true] %s1403_s10 }
 0x22b   : > { %v1135_v27 = vsel %vm3069_vm0, %v1072_v17, %v1104_v26 }
 0x22c   : > { %v1167_v31 = vmul.f32 %v1135_v27, %v816_v22  ;;  %v852_v32 = vpop.permute.xlu1 %851  ;;  %v1184_v34 = vadd.f32 %v1168_v25, %v1152_v29 }
 0x22e   : > { %v1183_v35 = vadd.f32 %v1167_v31, %v1151_v28  ;;  %v850_v36 = vpop.permute.xlu0 %849 }
 0x22f   : > { %v912_v37 = vsel %vm3069_vm0, %v850_v36, %v882_v42  ;;  %v819_v42 = vld [vmem:[%s3076_s18 + $0x18] sm:$0xff] }
 0x230   : > { %v1830_v39 = vpack.c.bf16 %v1184_v34, %v1183_v35  ;;  %v944_v40 = vmul.f32 %v912_v37, %v817_v18  ;;  %v854_v52 = vpop.permute.xlu1 %853  ;;  %v1153_v34 = vmul.f32 %v802_v41, %v2889_v54  ;;  %v1154_v35 = vmul.f32 %v803_v45, %v2895_v56 }
 0x232   : > { %1831 = vst [vmem:[%s3101_s5] sm:$0xff] %v1830_v39   ;;  %v960_v49 = vadd.f32 %v944_v40, %v928_v38  ;;  %v884_v44 = vpop.permute.xlu0 %883  ;;  %v804_v40 = vld [vmem:[%s2839_s4 + $0x20] sm:$0xff] }
 0x233   : > { %v913_v46 = vsel %vm3069_vm0, %v852_v32, %v884_v44  ;;  %v805_v44 = vld [vmem:[%s2839_s4 + $0x28] sm:$0xff]  ;;  %v931_v54 = vmul.f32 %v804_v40, %v2901_v57 }
 0x234   : > { %v976_v17 = vmul.f32 0.17677669, %v960_v49  ;;  %v945_v18 = vmul.f32 %v913_v46, %v818_v43  ;;  %v886_v19 = vpop.permute.xlu1 %885 }
 0x235   : > { %v914_v20 = vsel %vm3069_vm0, %v854_v52, %v886_v19  ;;  %v820_v52 = vld [vmem:[%s3076_s18 + $0x20] sm:$0xff] }
 0x236   : > { %v1790_v22 = vpack.c.bf16 %v976_v17, %v975_v47  ;;  %v961_v23 = vadd.f32 %v945_v18, %v929_v51  ;;  %v946_v24 = vmul.f32 %v914_v20, %v819_v42  ;;  %v1076_v25 = vpop.permute.xlu0 %1075  ;;  %v821_v51 = vld [vmem:[%s3076_s18 + $0x28] sm:$0xff] }
 0x238   : > { %1791 = vst [vmem:[%s3113_s16] sm:$0xff] %v1790_v22   ;;  %v962_v26 = vadd.f32 %v946_v24, %v930_v21  ;;  %v1078_v53 = vpop.permute.xlu1 %1077  ;;  %v977_v27 = vmul.f32 0.17677669, %v961_v23 }
 0x23a   : > { %v978_v28 = vmul.f32 0.17677669, %v962_v26  ;;  %v1108_v29 = vpop.permute.xlu0 %1107 }
 0x23b   : > { %v1137_v30 = vsel %vm3069_vm0, %v1076_v25, %v1108_v29 }
 0x23c   : > { %v1795_v55 = vpack.c.bf16 %v978_v28, %v977_v27  ;;  %v1169_v31 = vmul.f32 %v1137_v30, %v818_v43  ;;  %v1110_v32 = vpop.permute.xlu1 %1109  ;;  %v1156_v27 = vmul.f32 %v805_v44, %v2911_v60 }
 0x23d   : > { %v1138_v33 = vsel %vm3069_vm0, %v1078_v53, %v1110_v32  ;;  %v1155_v53 = vmul.f32 %v804_v40, %v2905_v58  ;;  %v806_v32 = vld [vmem:[%s2839_s4 + $0x30] sm:$0xff] }
 0x23e   : > { %1907 = vst [vmem:[%s3113_s16 + $0x8] sm:$0xff] %v1795_v55   ;;  %v1170_v36 = vmul.f32 %v1138_v33, %v819_v42  ;;  %v856_v37 = vpop.permute.xlu0 %855  ;;  %v1185_v38 = vadd.f32 %v1169_v31, %v1153_v34  ;;  %v932_v42 = vmul.f32 %v805_v44, %v2907_v59  ;;  %v822_v33 = vld [vmem:[%s3076_s18 + $0x30] sm:$0xff]  ;;  %v933_v58 = vmul.f32 %v806_v32, %v2917_v61 }
 0x240   : > { %v1186_v50 = vadd.f32 %v1170_v36, %v1154_v35  ;;  %v858_v39 = vpop.permute.xlu1 %857  ;;  %v807_v36 = vld [vmem:[%s2839_s4 + $0x38] sm:$0xff] }
 0x241   : > { %v934_v40 = vmul.f32 %v807_v36, %v2923_v63 }
 0x242   : > { %v1835_v49 = vpack.c.bf16 %v1186_v50, %v1185_v38  ;;  %v888_v43 = vpop.permute.xlu0 %887  ;;  %v823_v38 = vld [vmem:[%s3076_s18 + $0x38] sm:$0xff] }
 0x243   : > { %v915_v46 = vsel %vm3069_vm0, %v856_v37, %v888_v43 }
 0x244   : > { %1914 = vst [vmem:[%s3101_s5 + $0x8] sm:$0xff] %v1835_v49   ;;  %v947_v41 = vmul.f32 %v915_v46, %v820_v52  ;;  %v890_v56 = vpop.permute.xlu1 %889 }
 0x245   : > { %v916_v45 = vsel %vm3069_vm0, %v858_v39, %v890_v56 }
 0x246   : > { %v963_v47 = vadd.f32 %v947_v41, %v931_v54  ;;  %v948_v17 = vmul.f32 %v916_v45, %v821_v51  ;;  %v1080_v18 = vpop.permute.xlu0 %1079 }
 0x248   : > { %v964_v19 = vadd.f32 %v948_v17, %v932_v42  ;;  %v1082_v20 = vpop.permute.xlu1 %1081  ;;  %v979_v21 = vmul.f32 0.17677669, %v963_v47  ;;  %v1157_v47 = vmul.f32 %v806_v32, %v2921_v62  ;;  %v1158_v17 = vmul.f32 %v807_v36, %v2927_v0 }
 0x24a   : > { %v980_v22 = vmul.f32 0.17677669, %v964_v19  ;;  %v1112_v23 = vpop.permute.xlu0 %1111 }
 0x24b   : > { %v1139_v57 = vsel %vm3069_vm0, %v1080_v18, %v1112_v23  ;;  %v808_v23 = vld [vmem:[%s2839_s4 + $0x40] sm:$0xff] }
 0x24c   : > { %v1800_v24 = vpack.c.bf16 %v980_v22, %v979_v21  ;;  %v1171_v25 = vmul.f32 %v1139_v57, %v820_v52  ;;  %v1114_v26 = vpop.permute.xlu1 %1113  ;;  %v824_v57 = vld [vmem:[%s3076_s18 + $0x40] sm:$0xff]  ;;  %v935_v62 = vmul.f32 %v808_v23, %v2933_v1 }
 0x24d   : > { %v1140_v59 = vsel %vm3069_vm0, %v1082_v20, %v1114_v26  ;;  %v809_v26 = vld [vmem:[%s2839_s4 + $0x48] sm:$0xff] }
 0x24e   : > { %1908 = vst [vmem:[%s3113_s16 + $0x10] sm:$0xff] %v1800_v24   ;;  %v1172_v28 = vmul.f32 %v1140_v59, %v821_v51  ;;  %v860_v29 = vpop.permute.xlu0 %859  ;;  %v1187_v30 = vadd.f32 %v1171_v25, %v1155_v53  ;;  %v825_v53 = vld [vmem:[%s3076_s18 + $0x48] sm:$0xff] }
 0x250   : > { %v1188_v55 = vadd.f32 %v1172_v28, %v1156_v27  ;;  %v862_v31 = vpop.permute.xlu1 %861 }
 0x252   : > { %v1840_v34 = vpack.c.bf16 %v1188_v55, %v1187_v30  ;;  %v892_v35 = vpop.permute.xlu0 %891 }
 0x253   : > { %v917_v37 = vsel %vm3069_vm0, %v860_v29, %v892_v35  ;;  %v936_v29 = vmul.f32 %v809_v26, %v2939_v3 }
 0x254   : > { %1915 = vst [vmem:[%s3101_s5 + $0x10] sm:$0xff] %v1840_v34   ;;  %v949_v50 = vmul.f32 %v917_v37, %v822_v33  ;;  %v894_v60 = vpop.permute.xlu1 %893 }
 0x255   : > { %v918_v39 = vsel %vm3069_vm0, %v862_v31, %v894_v60  ;;  %v1160_v60 = vmul.f32 %v809_v26, %v2943_v4 }
 0x256   : > { %v965_v52 = vadd.f32 %v949_v50, %v933_v58  ;;  %v950_v49 = vmul.f32 %v918_v39, %v823_v38  ;;  %v1084_v43 = vpop.permute.xlu0 %1083  ;;  %v1159_v50 = vmul.f32 %v808_v23, %v2937_v2 }
 0x258   : > { %v966_v44 = vadd.f32 %v950_v49, %v934_v40  ;;  %v1086_v46 = vpop.permute.xlu1 %1085  ;;  %v981_v51 = vmul.f32 0.17677669, %v965_v52 }
 0x25a   : > { %v982_v54 = vmul.f32 0.17677669, %v966_v44  ;;  %v1116_v41 = vpop.permute.xlu0 %1115  ;;  %v810_v44 = vld [vmem:[%s2839_s4 + $0x50] sm:$0xff] }
 0x25b   : > { %v1141_v61 = vsel %vm3069_vm0, %v1084_v43, %v1116_v41  ;;  %v811_v41 = vld [vmem:[%s2839_s4 + $0x58] sm:$0xff]  ;;  %v937_v2 = vmul.f32 %v810_v44, %v2949_v5  ;;  %v1161_v26 = vmul.f32 %v810_v44, %v2953_v6 }
 0x25c   : > { %v1805_v56 = vpack.c.bf16 %v982_v54, %v981_v51  ;;  %v1173_v45 = vmul.f32 %v1141_v61, %v822_v33  ;;  %v1118_v42 = vpop.permute.xlu1 %1117 }
 0x25d   : > { %v1142_v63 = vsel %vm3069_vm0, %v1086_v46, %v1118_v42  ;;  %v826_v46 = vld [vmem:[%s3076_s18 + $0x50] sm:$0xff] }
 0x25e   : > { %1909 = vst [vmem:[%s3113_s16 + $0x18] sm:$0xff] %v1805_v56   ;;  %v1174_v18 = vmul.f32 %v1142_v63, %v823_v38  ;;  %v864_v19 = vpop.permute.xlu0 %863  ;;  %v1189_v20 = vadd.f32 %v1173_v45, %v1157_v47  ;;  %v827_v56 = vld [vmem:[%s3076_s18 + $0x58] sm:$0xff]  ;;  %v938_v63 = vmul.f32 %v811_v41, %v2955_v7 }
 0x260   : > { %v1190_v21 = vadd.f32 %v1174_v18, %v1158_v17  ;;  %v866_v22 = vpop.permute.xlu1 %865 }
 0x262   : > { %v1845_v24 = vpack.c.bf16 %v1190_v21, %v1189_v20  ;;  %v896_v25 = vpop.permute.xlu0 %895 }
 0x263   : > { %v919_v59 = vsel %vm3069_vm0, %v864_v19, %v896_v25 }
 0x264   : > { %1916 = vst [vmem:[%s3101_s5 + $0x18] sm:$0xff] %v1845_v24   ;;  %v951_v27 = vmul.f32 %v919_v59, %v824_v57  ;;  %v898_v0 = vpop.permute.xlu1 %897  ;;  %v1162_v59 = vmul.f32 %v811_v41, %v2959_v8 }
 0x265   : > { %v920_v28 = vsel %vm3069_vm0, %v866_v22, %v898_v0 }
 0x266   : > { %v967_v30 = vadd.f32 %v951_v27, %v935_v62  ;;  %v952_v55 = vmul.f32 %v920_v28, %v825_v53  ;;  %v1088_v31 = vpop.permute.xlu0 %1087 }
 0x268   : > { %v968_v32 = vadd.f32 %v952_v55, %v936_v29  ;;  %v1090_v33 = vpop.permute.xlu1 %1089  ;;  %v983_v34 = vmul.f32 0.17677669, %v967_v30  ;;  %v812_v29 = vld [vmem:[%s2839_s4 + $0x60] sm:$0xff] }
 0x269   : > { %v828_v30 = vld [vmem:[%s3076_s18 + $0x60] sm:$0xff]  ;;  %v939_v6 = vmul.f32 %v812_v29, %v2965_v9  ;;  %v1163_v44 = vmul.f32 %v812_v29, %v2969_v10 }
 0x26a   : > { %v984_v35 = vmul.f32 0.17677669, %v968_v32  ;;  %v1120_v36 = vpop.permute.xlu0 %1119  ;;  %v813_v32 = vld [vmem:[%s2839_s4 + $0x68] sm:$0xff] }
 0x26b   : > { %v1143_v1 = vsel %vm3069_vm0, %v1088_v31, %v1120_v36 }
 0x26c   : > { %v1810_v37 = vpack.c.bf16 %v984_v35, %v983_v34  ;;  %v1175_v38 = vmul.f32 %v1143_v1, %v824_v57  ;;  %v1122_v58 = vpop.permute.xlu1 %1121  ;;  %v829_v34 = vld [vmem:[%s3076_s18 + $0x68] sm:$0xff]  ;;  %v940_v1 = vmul.f32 %v813_v32, %v2971_v11 }
 0x26d   : > { %v1144_v3 = vsel %vm3069_vm0, %v1090_v33, %v1122_v58 }
 0x26e   : > { %1910 = vst [vmem:[%s3113_s16 + $0x20] sm:$0xff] %v1810_v37   ;;  %v1176_v39 = vmul.f32 %v1144_v3, %v825_v53  ;;  %v868_v40 = vpop.permute.xlu0 %867  ;;  %v1191_v52 = vadd.f32 %v1175_v38, %v1159_v50 }
 0x270   : > { %v1192_v49 = vadd.f32 %v1176_v39, %v1160_v60  ;;  %v870_v43 = vpop.permute.xlu1 %869 }
 0x272   : > { %v1850_v51 = vpack.c.bf16 %v1192_v49, %v1191_v52  ;;  %v900_v54 = vpop.permute.xlu0 %899 }
 0x273   : > { %v921_v61 = vsel %vm3069_vm0, %v868_v40, %v900_v54 }
 0x274   : > { %1917 = vst [vmem:[%s3101_s5 + $0x20] sm:$0xff] %v1850_v51   ;;  %v953_v45 = vmul.f32 %v921_v61, %v826_v46  ;;  %v902_v4 = vpop.permute.xlu1 %901 }
 0x275   : > { %v922_v42 = vsel %vm3069_vm0, %v870_v43, %v902_v4 }
 0x276   : > { %v969_v47 = vadd.f32 %v953_v45, %v937_v2  ;;  %v954_v17 = vmul.f32 %v922_v42, %v827_v56  ;;  %v1092_v18 = vpop.permute.xlu0 %1091  ;;  %v814_v2 = vld [vmem:[%s2839_s4 + $0x70] sm:$0xff] }
 0x277   : > { %v830_v45 = vld [vmem:[%s3076_s18 + $0x70] sm:$0xff]  ;;  %v941_v10 = vmul.f32 %v814_v2, %v2981_v13 }
 0x278   : > { %v970_v19 = vadd.f32 %v954_v17, %v938_v63  ;;  %v1094_v20 = vpop.permute.xlu1 %1093  ;;  %v985_v21 = vmul.f32 0.17677669, %v969_v47  ;;  %v815_v63 = vld [vmem:[%s2839_s4 + $0x78] sm:$0xff]  ;;  %s3456_s4 = sld [smem:[#allocation28_spill]] }
 0x279   : > { %v831_v17 = vld [vmem:[%s3076_s18 + $0x78] sm:$0xff]  ;;  %s2268_s18 = scalar_lea.vmem %s3237_s12, 1024 }
 0x27a   : > { %v986_v22 = vmul.f32 0.17677669, %v970_v19  ;;  %v1124_v23 = vpop.permute.xlu0 %1123  ;;  %p2269_p9 = scmp.ne.s32.totalorder %s3237_s12, %s2268_s18  ;;  %p2276_p2 = scmp.lt.s32.totalorder %s2274_s30, %s2268_s18 }
 0x27b   : > { %v1145_v5 = vsel %vm3069_vm0, %v1092_v18, %v1124_v23 }
 0x27c   : > { %v1815_v57 = vpack.c.bf16 %v986_v22, %v985_v21  ;;  %v1177_v24 = vmul.f32 %v1145_v5, %v826_v46  ;;  %v1126_v25 = vpop.permute.xlu1 %1125  ;;  %v1164_v46 = vmul.f32 %v813_v32, %v2975_v12  ;;  %p2270_p11 = pnand %p2269_p9, %p3457_p3  ;;  %p2277_p12 = por %p2276_p2, %p2275_p13 }
 0x27d   : > { %v1146_v7 = vsel %vm3069_vm0, %v1094_v20, %v1126_v25  ;;  %v942_v20 = vmul.f32 %v815_v63, %v2987_v15 }
 0x27e   : > { %1911 = vst [vmem:[%s3113_s16 + $0x28] sm:$0xff] %v1815_v57   ;;  %v1178_v53 = vmul.f32 %v1146_v7, %v827_v56  ;;  %v872_v62 = vpop.permute.xlu0 %871  ;;  %v1193_v27 = vadd.f32 %v1177_v24, %v1161_v26  ;;  %s3235_s28 = scalar_lea.hbm %s3456_s4, %s3226_s1  ;;  %p2271_p0 = pneg %p2270_p11 }
 0x280   : > { %v1194_v0 = vadd.f32 %v1178_v53, %v1162_v59  ;;  %v874_v28 = vpop.permute.xlu1 %873  ;;  %p2278_p6 = pnand %p2277_p12, %p2271_p0 }
 0x282   : > { %v1855_v55 = vpack.c.bf16 %v1194_v0, %v1193_v27  ;;  %v904_v31 = vpop.permute.xlu0 %903  ;;  %v1166_v27 = vmul.f32 %v815_v63, %v2991_v16 }
 0x283   : > { %v923_v33 = vsel %vm3069_vm0, %v872_v62, %v904_v31  ;;  %v1165_v62 = vmul.f32 %v814_v2, %v2985_v14 }
 0x284   : > { %1918 = vst [vmem:[%s3101_s5 + $0x28] sm:$0xff] %v1855_v55   ;;  %v955_v35 = vmul.f32 %v923_v33, %v828_v30  ;;  %v906_v8 = vpop.permute.xlu1 %905 }
 0x285   : > { %v924_v36 = vsel %vm3069_vm0, %v874_v28, %v906_v8 }
 0x286   : > { %v971_v37 = vadd.f32 %v955_v35, %v939_v6  ;;  %v956_v38 = vmul.f32 %v924_v36, %v829_v34  ;;  %v1096_v58 = vpop.permute.xlu0 %1095 }
 0x288   : > { %v972_v3 = vadd.f32 %v956_v38, %v940_v1  ;;  %v1098_v50 = vpop.permute.xlu1 %1097  ;;  %v987_v60 = vmul.f32 0.17677669, %v971_v37 }
 0x28a   : > { %v988_v39 = vmul.f32 0.17677669, %v972_v3  ;;  %v1128_v40 = vpop.permute.xlu0 %1127 }
 0x28b   : > { %v1147_v9 = vsel %vm3069_vm0, %v1096_v58, %v1128_v40 }
 0x28c   : > { %v1820_v52 = vpack.c.bf16 %v988_v39, %v987_v60  ;;  %v1179_v49 = vmul.f32 %v1147_v9, %v828_v30  ;;  %v1130_v43 = vpop.permute.xlu1 %1129 }
 0x28d   : > { %v1148_v11 = vsel %vm3069_vm0, %v1098_v50, %v1130_v43 }
 0x28e   : > { %1912 = vst [vmem:[%s3113_s16 + $0x30] sm:$0xff] %v1820_v52   ;;  %v1180_v51 = vmul.f32 %v1148_v11, %v829_v34  ;;  %v876_v54 = vpop.permute.xlu0 %875  ;;  %v1195_v41 = vadd.f32 %v1179_v49, %v1163_v44 }
 0x290   : > { %v1196_v61 = vadd.f32 %v1180_v51, %v1164_v46  ;;  %v878_v56 = vpop.permute.xlu1 %877 }
 0x292   : > { %v1860_v4 = vpack.c.bf16 %v1196_v61, %v1195_v41  ;;  %v908_v42 = vpop.permute.xlu0 %907 }
 0x293   : > { %v925_v47 = vsel %vm3069_vm0, %v876_v54, %v908_v42 }
 0x294   : > { %1919 = vst [vmem:[%s3101_s5 + $0x30] sm:$0xff] %v1860_v4   ;;  %v957_v12 = vmul.f32 %v925_v47, %v830_v45  ;;  %v910_v18 = vpop.permute.xlu1 %909 }
 0x295   : > { %v926_v19 = vsel %vm3069_vm0, %v878_v56, %v910_v18 }
 0x296   : > { %v973_v21 = vadd.f32 %v957_v12, %v941_v10  ;;  %v958_v22 = vmul.f32 %v926_v19, %v831_v17  ;;  %v1100_v23 = vpop.permute.xlu0 %1099 }
 0x298   : > { %v974_v5 = vadd.f32 %v958_v22, %v942_v20  ;;  %v1102_v57 = vpop.permute.xlu1 %1101  ;;  %v989_v13 = vmul.f32 0.17677669, %v973_v21 }
 0x29a   : > { %v990_v24 = vmul.f32 0.17677669, %v974_v5  ;;  %v1132_v25 = vpop.permute.xlu0 %1131 }
 0x29b   : > { %v1149_v15 = vsel %vm3069_vm0, %v1100_v23, %v1132_v25 }
 0x29c   : > { %v1825_v7 = vpack.c.bf16 %v990_v24, %v989_v13  ;;  %v1181_v26 = vmul.f32 %v1149_v15, %v830_v45  ;;  %v1134_v59 = vpop.permute.xlu1 %1133 }
 0x29d   : > { %v1150_v53 = vsel %vm3069_vm0, %v1102_v57, %v1134_v59 }
 0x29e   : > { %1913 = vst [vmem:[%s3113_s16 + $0x38] sm:$0xff] %v1825_v7   ;;  %v1182_v0 = vmul.f32 %v1150_v53, %v831_v17 }
 0x29f   : > { %2281 = shalt.err (!%p2278_p6)
}
 0x2a0   : > { %s2282_s16 = scalar_lea.hbm %s3235_s28, 1024  ;;  %s2286_s0 = scalar_lea.hbm %s3456_s4, 4096 }
 0x2a1   : > { %p2283_p5 = scmp.ne.s32.totalorder %s3235_s28, %s2282_s16  ;;  %p2287_p4 = scmp.lt.u32.totalorder %s3235_s28, %s3456_s4 }
 0x2a2   : > { %p2288_p1 = scmp.lt.u32.totalorder %s2286_s0, %s2282_s16  ;;  %p2290_p9 = scmp.lt.u32.totalorder %s2282_s16, %s3235_s28 }
 0x2a3   : > { %p2284_p8 = pnand %p2283_p5, %p3457_p3 }
 0x2a4   : > { %p2289_p10 = por %p2288_p1, %p2287_p4 }
 0x2a5   : > { %p2285_p7 = pneg %p2284_p8 }
 0x2a6   : > { %p2291_p11 = por %p2290_p9, %p2289_p10 }
 0x2a8   : > { %p2292_p0 = pnand %p2291_p11, %p2285_p7 }
 0x2aa   : > { %2295 = shalt.err (!%p2292_p0)
}
 0x2ab   : > { %s2472_s18 = smov 64   ;;  %s2473_s26 = smov 4   ;;  %v1197_v14 = vadd.f32 %v1181_v26, %v1165_v62  ;;  %v1198_v16 = vadd.f32 %v1182_v0, %v1166_v27 }
 0x2ac   : > { %1986 = dma.vmem_to_hbm [thread:$0]  (%p3457_p3), %s3237_s12, 1024, %s3235_s28, %s1360_s14, %s2472_s18, %s2472_s18, %s2473_s26  }
 0x2ad   : > { %s1421_s30 = sshll.u32 %s3033_s17, 4  ;;  %v1865_v48 = vpack.c.bf16 %v1198_v16, %v1197_v14  ;;  %s3458_s13 = sld [smem:[#allocation29_spill]]  ;;  %s3283_s30 = int_to_ptr.vmem [resolvable:$true] %s1421_s30 }
 0x2ae   : > { %s3459_s12 = sld [smem:[#allocation30_spill]]  ;;  %s3294_s28 = scalar_lea.sflag [#allocation11], %s324_s19 }
 0x2af   : > { %1920 = vst [vmem:[%s3101_s5 + $0x38] sm:$0xff] %v1865_v48   ;;  %s2296_s14 = scalar_lea.vmem %s3281_s10, 1024  ;;  %s2474_s2 = smov [#allocation10]  }
 0x2b0   : > { %p2297_p13 = scmp.ne.s32.totalorder %s3281_s10, %s2296_s14  ;;  %s2300_s16 = sshll.u32 %s2474_s2, 4  ;;  %s2301_s16 = int_to_ptr.vmem [resolvable:$false] %s2300_s16 }
 0x2b1   : > { %s2302_s20 = scalar_lea.vmem %s2301_s16, 2048  ;;  %p2303_p6 = scmp.lt.s32.totalorder %s3281_s10, %s2301_s16 }
 0x2b2   : > { %p2298_p2 = pnand %p2297_p13, %p3457_p3  ;;  %p2304_p5 = scmp.lt.s32.totalorder %s2302_s20, %s2296_s14 }
 0x2b3   : > { %s3277_s0 = scalar_lea.hbm %s3458_s13, %s3226_s1 }
 0x2b4   : > { %s3289_s17 = scalar_lea.hbm %s3459_s12, %s3226_s1  ;;  %p2299_p12 = pneg %p2298_p2 }
 0x2b5   : > { %p2305_p8 = por %p2304_p5, %p2303_p6 }
 0x2b7   : > { %p2306_p7 = pnand %p2305_p8, %p2299_p12 }
 0x2b9   : > { %2309 = shalt.err (!%p2306_p7)
}
 0x2ba   : > { %s2310_s15 = scalar_lea.hbm %s3277_s0, 1024  ;;  %s2314_s1 = scalar_lea.hbm %s3458_s13, 4096 }
 0x2bb   : > { %p2311_p4 = scmp.ne.s32.totalorder %s3277_s0, %s2310_s15  ;;  %p2315_p9 = scmp.lt.u32.totalorder %s3277_s0, %s3458_s13 }
 0x2bc   : > { %p2316_p11 = scmp.lt.u32.totalorder %s2314_s1, %s2310_s15  ;;  %p2318_p13 = scmp.lt.u32.totalorder %s2310_s15, %s3277_s0 }
 0x2bd   : > { %p2312_p1 = pnand %p2311_p4, %p3457_p3 }
 0x2be   : > { %p2317_p0 = por %p2316_p11, %p2315_p9 }
 0x2bf   : > { %p2313_p10 = pneg %p2312_p1 }
 0x2c0   : > { %p2319_p2 = por %p2318_p13, %p2317_p0 }
 0x2c2   : > { %p2320_p12 = pnand %p2319_p2, %p2313_p10 }
 0x2c4   : > { %2323 = shalt.err (!%p2320_p12)
}
 0x2c5   : > { %1987 = dma.vmem_to_hbm [thread:$0]  (%p3457_p3), %s3281_s10, 1024, %s3277_s0, %s3294_s28, %s2472_s18, %s2472_s18, %s2473_s26  }
 0x2c6   : > { %s2324_s14 = scalar_lea.vmem %s3283_s30, 1024  ;;  %s2475_s2 = smov [#allocation12]  }
 0x2c7   : > { %p2325_p6 = scmp.ne.s32.totalorder %s3283_s30, %s2324_s14  ;;  %s2328_s16 = sshll.u32 %s2475_s2, 4  ;;  %s2329_s16 = int_to_ptr.vmem [resolvable:$false] %s2328_s16 }
 0x2c8   : > { %s2330_s20 = scalar_lea.vmem %s2329_s16, 2048  ;;  %p2331_p7 = scmp.lt.s32.totalorder %s3283_s30, %s2329_s16 }
 0x2c9   : > { %p2326_p5 = pnand %p2325_p6, %p3457_p3  ;;  %p2332_p4 = scmp.lt.s32.totalorder %s2330_s20, %s2324_s14 }
 0x2cb   : > { %p2327_p8 = pneg %p2326_p5  ;;  %p2333_p1 = por %p2332_p4, %p2331_p7 }
 0x2cd   : > { %p2334_p10 = pnand %p2333_p1, %p2327_p8 }
 0x2cf   : > { %2337 = shalt.err (!%p2334_p10)
}
 0x2d0   : > { %s2338_s10 = scalar_lea.hbm %s3289_s17, 1024  ;;  %s2342_s19 = scalar_lea.hbm %s3459_s12, 4096 }
 0x2d1   : > { %p2339_p9 = scmp.ne.s32.totalorder %s3289_s17, %s2338_s10  ;;  %p2343_p13 = scmp.lt.u32.totalorder %s3289_s17, %s3459_s12 }
 0x2d2   : > { %p2344_p2 = scmp.lt.u32.totalorder %s2342_s19, %s2338_s10  ;;  %p2346_p6 = scmp.lt.u32.totalorder %s2338_s10, %s3289_s17 }
 0x2d3   : > { %p2340_p11 = pnand %p2339_p9, %p3457_p3 }
 0x2d4   : > { %p2345_p12 = por %p2344_p2, %p2343_p13 }
 0x2d5   : > { %p2341_p0 = pneg %p2340_p11 }
 0x2d6   : > { %p2347_p5 = por %p2346_p6, %p2345_p12 }
 0x2d8   : > { %p2348_p8 = pnand %p2347_p5, %p2341_p0 }
 0x2da   : > { %2351 = shalt.err (!%p2348_p8)
}
 0x2db   : > { %1988 = dma.vmem_to_hbm [thread:$0]  (%p3457_p3), %s3283_s30, 1024, %s3289_s17, %s3294_s28, %s2472_s18, %s2472_s18, %s2473_s26  }
 0x2dc PF: > { %p2019_p7 = scmp.ge.s32.totalorder %s2458_s7, 2  ;;  %s1436_s6 = sand.u32 1, %s2430_s24  }
 0x2dd   : > { %p3460_p4 = scmp.ne.s32.totalorder %s3438_s21, 0  ;;  %s1437_s8 = scalar_lea.sflag [#allocation4], %s1436_s6 }
 0x2df   : > { %p2007_p1 = pnand %p2019_p7, %p3460_p4 }
 0x2e1   : > { %2409 = dma.done.wait (!%p2007_p1), %s1437_s8, 1024  }
 0x2e2   : > { %2411 = vsyncadd (!%p2007_p1), %s1437_s8, 4294966272  ;;  %s3461_s11 = sadd.s32 4294967294, %s2458_s7  }
 0x2e3   : > { %s1445_s14 = sand.u32 1, %s3461_s11  }
 0x2e4   : > { %s1446_s2 = scalar_lea.sflag [#allocation11], %s1445_s14 }
 0x2e5   : > { %2413 = dma.done.wait (!%p2007_p1), %s1446_s2, 2048  }
 0x2e6   : > { %2415 = vsyncadd (!%p2007_p1), %s1446_s2, 4294965248  ;;  %s27_s7 = sadd.s32 1, %s2458_s7   ;;  %s3462_s18 = sld [smem:[#allocation18_spill]] }
 0x2e7   : > { %p24_p3 = scmp.ge.s32.totalorder %s27_s7, 6   ;;  %s3463_s26 = sld [smem:[#allocation24_spill]] }
 0x2e8   : > { %s3464_s28 = sld [smem:[#allocation21_spill]]  ;;  %s3465_s30 = sld [smem:[#allocation22_spill]] }
 0x2e9   : > { %s3466_s17 = sld [smem:[#allocation23_spill]]  ;;  %s3467_s21 = smov %s2422_s22 }
 0x2ea   : > { %s3468_s22 = smov %s2426_s23  ;;  %s3469_s23 = smov %s2655_s27 }
 0x2eb   : > { %s3470_s24 = smov %s2434_s25  ;;  %s3472_s27 = smov %s2450_s29 }
 0x2ec   : > { %s3471_s25 = smov %s3462_s18  ;;  %26 = sbr.rel (!%p24_p3) target bundleno = 19 (0x13), region = 139 }
 0x2ee   : > { %s3473_s29 = smov %s3465_s30 }
 0x2ef   : > { %s3474_s30 = smov %s3466_s17 }
 0x2f3   :  { %1460 = vsyncpa [#allocation3], 1 }
 0x2f4   :  { %1462 = vsyncpa [#allocation3 + $0x1], 1 }
 0x2f5   :  { %1463 = vsyncpa [#allocation6], 1 }
 0x2f6   :  { %1464 = vsyncpa [#allocation4], 1 }
 0x2f7   :  { %1466 = vsyncpa [#allocation4 + $0x1], 1 }
 0x2f8   :  { %1467 = vsyncpa [#allocation11], 1 }
 0x2f9   :  { %1469 = vsyncpa [#allocation11 + $0x1], 1 }

</bundles_post_ra>
